<compile_context>
chip_gen: v5e
topology: v5e:2x2
jax: 0.10.0
libtpu: 0.0.40
codegen_flags: <defaults>
</compile_context>

<pallas_src>
import functools

import jax
import jax.numpy as jnp
from jax.experimental import pallas as pl
from jax.experimental.pallas import tpu as pltpu

BN_EPS = 1e-5
C_PAD = 128                  # lane-dense channel padding carried through the net
CLS_PAD = 128                # lane-dense class padding for the head
TILE_M_MAX = 1024            # M-tile for the conv1 GEMM (grid collapses to 1 here)
VMEM_LIMIT = 32 * 1024 * 1024


def _round_up(x, m):
    return (x + m - 1) // m * m


def _tile_m(m):
    m8 = _round_up(m, 8)
    if m8 <= TILE_M_MAX:
        return m8, m8
    return TILE_M_MAX, _round_up(m, TILE_M_MAX)


def _pad2d(a, rows, cols):
    return jnp.pad(a, ((0, rows - a.shape[0]), (0, cols - a.shape[1])))


# --------------------------- Pallas kernels ---------------------------------

def conv_bias_kernel(p_ref, w_ref, b_ref, o_ref):
    # conv1 tile: p [tm, K_pad] bf16, w [K_pad, C_PAD] bf16, b [1, C_PAD] f32.
    y = jnp.dot(p_ref[...], w_ref[...], preferred_element_type=jnp.float32)
    o_ref[...] = (y + b_ref[...]).astype(o_ref.dtype)


def make_bn_fused_kernel(m_real):
    # BnLayer.forward fully fused: y = relu(conv(x)); BatchNorm2d in training
    # mode (batch statistics, biased variance, eps=1e-5).  m_real = number of
    # real (non-padded) rows; padded patch rows give y == 0 and are masked out
    # of the centered-variance sum, so statistics use exactly 1/m_real.
    inv_count = 1.0 / float(m_real)

    def kernel(p_ref, w_ref, g_ref, b_ref, o_ref):
        y = jnp.dot(p_ref[...], w_ref[...], preferred_element_type=jnp.float32)
        y = jnp.maximum(y, 0.0)                                     # ReLU
        mean = jnp.sum(y, axis=0, keepdims=True) * inv_count        # [1, C_PAD]
        row = jax.lax.broadcasted_iota(jnp.int32, y.shape, 0)
        centered = jnp.where(row < m_real, y - mean, 0.0)
        var = jnp.sum(centered * centered, axis=0, keepdims=True) * inv_count
        scale = g_ref[...] * jax.lax.rsqrt(var + BN_EPS)
        shift = b_ref[...] - mean * scale
        o_ref[...] = (y * scale + shift).astype(o_ref.dtype)

    return kernel


def make_head_kernel(n_classes):
    # adaptive_max_pool2d(., 1) + flatten + Linear + softmax(dim=-1).
    def head_kernel(x_ref, w_ref, b_ref, o_ref):
        pooled = jnp.max(x_ref[...].astype(jnp.float32), axis=1)    # [N, C_PAD]
        logits = jnp.dot(pooled, w_ref[...],
                         preferred_element_type=jnp.float32) + b_ref[...]
        lane = jax.lax.broadcasted_iota(jnp.int32, logits.shape, 1)
        logits = jnp.where(lane < n_classes, logits, -1e30)         # mask padding
        z = logits - jnp.max(logits, axis=-1, keepdims=True)
        e = jnp.exp(z)
        o_ref[...] = e / jnp.sum(e, axis=-1, keepdims=True)
    return head_kernel


# ------------------------------ glue (JAX) ----------------------------------

def _im2col(x, kh, kw, stride, pad):
    # x: [N, H, W, C] -> ([N*Ho*Wo, kh*kw*C] with (kh, kw, C) flatten order, Ho, Wo)
    N, H, W, C = x.shape
    xp = jnp.pad(x, ((0, 0), (pad, pad), (pad, pad), (0, 0)))
    Ho = (H + 2 * pad - kh) // stride + 1
    Wo = (W + 2 * pad - kw) // stride + 1
    cols = []
    for i in range(kh):
        for j in range(kw):
            cols.append(xp[:, i:i + stride * Ho:stride,
                           j:j + stride * Wo:stride, :])            # [N, Ho, Wo, C]
    patches = jnp.stack(cols, axis=3)                               # [N, Ho, Wo, kh*kw, C]
    return patches.reshape(N * Ho * Wo, kh * kw * C), Ho, Wo


def conv2d_bias(x, w_gemm, bias, *, kh, kw, stride, pad):
    # conv1: Conv2d(3, 10, k=5, s=1, p=2) with bias, no activation.
    N = x.shape[0]
    patches, Ho, Wo = _im2col(x.astype(jnp.bfloat16), kh, kw, stride, pad)
    M = patches.shape[0]
    K_pad = w_gemm.shape[0]
    tm, M_pad = _tile_m(M)
    patches = _pad2d(patches, M_pad, K_pad)
    grid = M_pad // tm
    out = pl.pallas_call(
        conv_bias_kernel,
        out_shape=jax.ShapeDtypeStruct((M_pad, C_PAD), jnp.bfloat16),
        grid_spec=pltpu.PrefetchScalarGridSpec(
            num_scalar_prefetch=0,
            grid=(grid,),
            in_specs=[pl.BlockSpec((tm, K_pad), lambda i: (i, 0)),
                      pl.BlockSpec((K_pad, C_PAD), lambda i: (0, 0)),
                      pl.BlockSpec((1, C_PAD), lambda i: (0, 0))],
            out_specs=pl.BlockSpec((tm, C_PAD), lambda i: (i, 0))),
        compiler_params=pltpu.CompilerParams(
            dimension_semantics=("parallel",),
            vmem_limit_bytes=VMEM_LIMIT),
    )(patches, w_gemm, bias)
    return out[:M].reshape(N, Ho, Wo, C_PAD)


def bn_layer(x, p, *, cin, stride):
    # BnLayer: conv 3x3 (bias=False, padding=1) + ReLU + BatchNorm, fused into
    # one pallas_call.  `cin` (static) drops the lane padding before im2col so
    # K only covers real channels.
    N = x.shape[0]
    xs = x[..., :cin]
    patches, Ho, Wo = _im2col(xs.astype(jnp.bfloat16), 3, 3, stride, 1)
    M = patches.shape[0]
    K_pad = p["w_gemm"].shape[0]
    M_pad = _round_up(M, 8)
    patches = _pad2d(patches, M_pad, K_pad)
    out = pl.pallas_call(
        make_bn_fused_kernel(M),
        out_shape=jax.ShapeDtypeStruct((M_pad, C_PAD), jnp.bfloat16),
        in_specs=[pl.BlockSpec(memory_space=pltpu.MemorySpace.VMEM)] * 4,
        out_specs=pl.BlockSpec(memory_space=pltpu.MemorySpace.VMEM),
        compiler_params=pltpu.CompilerParams(vmem_limit_bytes=VMEM_LIMIT),
    )(patches, p["w_gemm"], p["gamma"], p["beta"])
    return out[:M].reshape(N, Ho, Wo, C_PAD)


def head(x, w_pad, b_pad, n_classes):
    # x: [N, H, W, C_PAD] bf16; w_pad: [C_PAD, CLS_PAD] f32; b_pad: [1, CLS_PAD].
    N, H, W, C = x.shape
    xr = x.reshape(N, H * W, C)              # channels on the lane axis
    probs = pl.pallas_call(
        make_head_kernel(n_classes),
        out_shape=jax.ShapeDtypeStruct((N, CLS_PAD), jnp.float32),
        in_specs=[pl.BlockSpec(memory_space=pltpu.MemorySpace.VMEM)] * 3,
        out_specs=pl.BlockSpec(memory_space=pltpu.MemorySpace.VMEM),
        compiler_params=pltpu.CompilerParams(vmem_limit_bytes=VMEM_LIMIT),
    )(xr, w_pad, b_pad)
    return probs[:, :n_classes]


# ------------------------------ model ---------------------------------------

def init_params(key, layers, c):
    n_blocks = len(layers) - 1
    keys = iter(jax.random.split(key, 4 + 6 * n_blocks))

    def rnd(shape, scale=0.1):
        return jax.random.normal(next(keys), shape, jnp.float32) * scale

    def conv_w_to_gemm(w):
        # PyTorch conv weight [Cout, Cin, kh, kw] ->
        # bf16 [round_up(kh*kw*Cin, 128), C_PAD]   (real Cin only in K).
        cout, cin, kh, kw = w.shape
        wt = jnp.transpose(w, (2, 3, 1, 0))                  # [kh, kw, Cin, Cout]
        wt = jnp.pad(wt, ((0, 0), (0, 0), (0, 0), (0, C_PAD - cout)))
        k = kh * kw * cin
        wg = wt.reshape(k, C_PAD)
        wg = jnp.pad(wg, ((0, _round_up(k, 128) - k), (0, 0)))
        return wg.astype(jnp.bfloat16)

    def vec_pad(v, width=C_PAD):
        return jnp.pad(v, (0, width - v.shape[0])).reshape(1, width).astype(jnp.float32)

    params = {
        "conv1": {   # nn.Conv2d(3, 10, kernel_size=5, stride=1, padding=2)
            "w_gemm": conv_w_to_gemm(rnd((10, 3, 5, 5))),
            "b": vec_pad(rnd((10,))),
        },
        "blocks": [],
    }
    for i in range(n_blocks):
        ni, nf = layers[i], layers[i + 1]
        blk = {
            "s2": {  # BnLayer(ni, nf, stride=2)
                "w_gemm": conv_w_to_gemm(rnd((nf, ni, 3, 3))),
                "gamma": vec_pad(1.0 + rnd((nf,))),
                "beta": vec_pad(rnd((nf,))),
            },
            "s1": {  # BnLayer(nf, nf, stride=1)
                "w_gemm": conv_w_to_gemm(rnd((nf, nf, 3, 3))),
                "gamma": vec_pad(1.0 + rnd((nf,))),
                "beta": vec_pad(rnd((nf,))),
            },
        }
        params["blocks"].append(blk)

    # nn.Linear(layers[-1], c): weight [c, layers[-1]], bias [c]
    w_out = rnd((c, layers[-1]))
    b_out = rnd((c,))
    params["head"] = {
        "w": jnp.pad(w_out.T, ((0, C_PAD - layers[-1]),
                               (0, CLS_PAD - c))).astype(jnp.float32),
        "b": vec_pad(b_out, CLS_PAD),
    }
    return params


def conv_bn_net_forward(params, x_nchw, *, layers, n_classes):
    # x_nchw: [N, 3, H, W] (PyTorch layout) -> [N, c] softmax probabilities.
    x = jnp.transpose(x_nchw, (0, 2, 3, 1)).astype(jnp.bfloat16)     # NCHW -> NHWC
    x = conv2d_bias(x, params["conv1"]["w_gemm"], params["conv1"]["b"],
                    kh=5, kw=5, stride=1, pad=2)
    for i, blk in enumerate(params["blocks"]):
        ni, nf = layers[i], layers[i + 1]
        x = bn_layer(x, blk["s2"], cin=ni, stride=2)
        x = bn_layer(x, blk["s1"], cin=nf, stride=1)
    return head(x, params["head"]["w"], params["head"]["b"], n_classes)


# ------------------------------ main -----------------------------------------

if __name__ == "__main__":
    layers = [10, 20, 40]    # layers[0] must be 10 to match conv1 (as in the PyTorch net)
    num_classes = 10

    key = jax.random.PRNGKey(0)
    pkey, xkey = jax.random.split(key)
    params = init_params(pkey, layers, num_classes)
    x = jax.random.normal(xkey, (2, 3, 16, 16), jnp.float32)          # NCHW like PyTorch

    fwd = jax.jit(functools.partial(conv_bn_net_forward,
                                    layers=tuple(layers),
                                    n_classes=num_classes))
    out = jax.block_until_ready(fwd(params, x))

    assert out.shape == (2, num_classes), out.shape
    row_sums = jnp.sum(out, axis=-1)
    assert bool(jnp.all(jnp.abs(row_sums - 1.0) < 1e-3)), row_sums
    assert bool(jnp.all(out >= 0.0))
    print("KERNEL_OK")
</pallas_src>

<mosaic_0001>
module attributes {stable_mosaic.version = 11 : i64} {
  func.func @conv_bias_kernel(%arg0: i32, %arg1: memref<512x128xbf16, #tpu.memory_space<vmem>>, %arg2: memref<128x128xbf16, #tpu.memory_space<vmem>>, %arg3: memref<1x128xf32, #tpu.memory_space<vmem>>, %arg4: memref<512x128xbf16, #tpu.memory_space<vmem>>) attributes {dimension_semantics = [#tpu.dimension_semantics<parallel>], iteration_bounds = array<i64: 1>, scalar_prefetch = 0 : i64, scratch_operands = 0 : i64, tpu.core_type = #tpu.core_type<tc>, window_params = [{transform_indices = @transform_0, window_bounds = array<i64: 512, 128>}, {pipeline_mode = #tpu.pipeline_mode<synchronous>, transform_indices = @transform_1, window_bounds = array<i64: 128, 128>}, {pipeline_mode = #tpu.pipeline_mode<synchronous>, transform_indices = @transform_2, window_bounds = array<i64: 1, 128>}, {transform_indices = @transform_3, window_bounds = array<i64: 512, 128>}]} {
    %c0 = arith.constant 0 : index
    %c0_0 = arith.constant 0 : index
    %0 = vector.load %arg1[%c0, %c0_0] : memref<512x128xbf16, #tpu.memory_space<vmem>>, vector<512x128xbf16>
    %c0_1 = arith.constant 0 : index
    %c0_2 = arith.constant 0 : index
    %1 = vector.load %arg2[%c0_1, %c0_2] : memref<128x128xbf16, #tpu.memory_space<vmem>>, vector<128x128xbf16>
    %cst = arith.constant dense<0.000000e+00> : vector<512x128xf32>
    %2 = tpu.matmul %0, %1, %cst {dimension_numbers = #tpu.dot_dimension_numbers<[1], [0], [0], [1], [0, 0, 1, 1], [], []>} : vector<512x128xbf16>, vector<128x128xbf16>, vector<512x128xf32> -> vector<512x128xf32>
    %c0_3 = arith.constant 0 : index
    %c0_4 = arith.constant 0 : index
    %3 = vector.load %arg3[%c0_3, %c0_4] : memref<1x128xf32, #tpu.memory_space<vmem>>, vector<1x128xf32>
    %4 = vector.broadcast %3 : vector<1x128xf32> to vector<512x128xf32>
    %5 = arith.addf %2, %4 : vector<512x128xf32>
    %6 = arith.truncf %5 : vector<512x128xf32> to vector<512x128xbf16>
    %c0_5 = arith.constant 0 : index
    %c0_6 = arith.constant 0 : index
    %7 = vector.load %arg4[%c0_5, %c0_6] : memref<512x128xbf16, #tpu.memory_space<vmem>>, vector<512x128xbf16>
    tpu.vector_store %arg4[%c0_5, %c0_6], %6 {strides = array<i32>} : memref<512x128xbf16, #tpu.memory_space<vmem>>, vector<512x128xbf16>,
    return
  }
  func.func @transform_0(%arg0: i32) -> (i32, i32) {
    %c0_i32 = arith.constant 0 : i32
    %c0_i32_0 = arith.constant 0 : i32
    return %arg0, %c0_i32 : i32, i32
  }
  func.func @transform_1(%arg0: i32) -> (i32, i32) {
    %c0_i32 = arith.constant 0 : i32
    %c0_i32_0 = arith.constant 0 : i32
    %c0_i32_1 = arith.constant 0 : i32
    return %c0_i32, %c0_i32_0 : i32, i32
  }
  func.func @transform_2(%arg0: i32) -> (i32, i32) {
    %c0_i32 = arith.constant 0 : i32
    %c0_i32_0 = arith.constant 0 : i32
    %c0_i32_1 = arith.constant 0 : i32
    return %c0_i32, %c0_i32_0 : i32, i32
  }
  func.func @transform_3(%arg0: i32) -> (i32, i32) {
    %c0_i32 = arith.constant 0 : i32
    %c0_i32_0 = arith.constant 0 : i32
    return %arg0, %c0_i32 : i32, i32
  }
}

module attributes {stable_mosaic.version = 11 : i64} {
  func.func @kernel(%arg0: memref<128x128xbf16, #tpu.memory_space<vmem>>, %arg1: memref<128x128xbf16, #tpu.memory_space<vmem>>, %arg2: memref<1x128xf32, #tpu.memory_space<vmem>>, %arg3: memref<1x128xf32, #tpu.memory_space<vmem>>, %arg4: memref<128x128xbf16, #tpu.memory_space<vmem>>) attributes {dimension_semantics = [], scalar_prefetch = 0 : i64, scratch_operands = 0 : i64, tpu.core_type = #tpu.core_type<tc>} {
    %c0 = arith.constant 0 : index
    %c0_0 = arith.constant 0 : index
    %0 = vector.load %arg0[%c0, %c0_0] : memref<128x128xbf16, #tpu.memory_space<vmem>>, vector<128x128xbf16>
    %c0_1 = arith.constant 0 : index
    %c0_2 = arith.constant 0 : index
    %1 = vector.load %arg1[%c0_1, %c0_2] : memref<128x128xbf16, #tpu.memory_space<vmem>>, vector<128x128xbf16>
    %cst = arith.constant dense<0.000000e+00> : vector<128x128xf32>
    %2 = tpu.matmul %0, %1, %cst {dimension_numbers = #tpu.dot_dimension_numbers<[1], [0], [0], [1], [0, 0, 1, 1], [], []>} : vector<128x128xbf16>, vector<128x128xbf16>, vector<128x128xf32> -> vector<128x128xf32>
    %cst_3 = arith.constant 0.000000e+00 : f32
    %3 = vector.broadcast %cst_3 : f32 to vector<128x128xf32>
    %4 = arith.maximumf %2, %3 : vector<128x128xf32>
    %cst_4 = arith.constant dense<0.000000e+00> : vector<128xf32>
    %5 = vector.multi_reduction <add>, %4, %cst_4 [0] : vector<128x128xf32> to vector<128xf32>
    %6 = vector.shape_cast %5 : vector<128xf32> to vector<1x128xf32>
    %cst_5 = arith.constant 7.812500e-03 : f32
    %7 = vector.broadcast %cst_5 : f32 to vector<1x128xf32>
    %8 = arith.mulf %6, %7 : vector<1x128xf32>
    %9 = tpu.iota {dimensions = array<i32: 0>} : vector<128x128xi32>
    %c128_i32 = arith.constant 128 : i32
    %10 = vector.broadcast %c128_i32 : i32 to vector<128x128xi32>
    %11 = arith.cmpi slt, %9, %10 : vector<128x128xi32>
    %12 = vector.broadcast %8 : vector<1x128xf32> to vector<128x128xf32>
    %13 = arith.subf %4, %12 : vector<128x128xf32>
    %cst_6 = arith.constant 0.000000e+00 : f32
    %14 = vector.broadcast %cst_6 : f32 to vector<128x128xf32>
    %15 = arith.select %11, %13, %14 : vector<128x128xi1>, vector<128x128xf32>
    %16 = arith.mulf %15, %15 : vector<128x128xf32>
    %cst_7 = arith.constant dense<0.000000e+00> : vector<128xf32>
    %17 = vector.multi_reduction <add>, %16, %cst_7 [0] : vector<128x128xf32> to vector<128xf32>
    %18 = vector.shape_cast %17 : vector<128xf32> to vector<1x128xf32>
    %cst_8 = arith.constant 7.812500e-03 : f32
    %19 = vector.broadcast %cst_8 : f32 to vector<1x128xf32>
    %20 = arith.mulf %18, %19 : vector<1x128xf32>
    %c0_9 = arith.constant 0 : index
    %c0_10 = arith.constant 0 : index
    %21 = vector.load %arg2[%c0_9, %c0_10] : memref<1x128xf32, #tpu.memory_space<vmem>>, vector<1x128xf32>
    %cst_11 = arith.constant 9.99999974E-6 : f32
    %22 = vector.broadcast %cst_11 : f32 to vector<1x128xf32>
    %23 = arith.addf %20, %22 : vector<1x128xf32>
    %24 = math.rsqrt %23 : vector<1x128xf32>
    %25 = arith.mulf %21, %24 : vector<1x128xf32>
    %c0_12 = arith.constant 0 : index
    %c0_13 = arith.constant 0 : index
    %26 = vector.load %arg3[%c0_12, %c0_13] : memref<1x128xf32, #tpu.memory_space<vmem>>, vector<1x128xf32>
    %27 = arith.mulf %8, %25 : vector<1x128xf32>
    %28 = arith.subf %26, %27 : vector<1x128xf32>
    %29 = vector.broadcast %25 : vector<1x128xf32> to vector<128x128xf32>
    %30 = arith.mulf %4, %29 : vector<128x128xf32>
    %31 = vector.broadcast %28 : vector<1x128xf32> to vector<128x128xf32>
    %32 = arith.addf %30, %31 : vector<128x128xf32>
    %33 = arith.truncf %32 : vector<128x128xf32> to vector<128x128xbf16>
    %c0_14 = arith.constant 0 : index
    %c0_15 = arith.constant 0 : index
    %34 = vector.load %arg4[%c0_14, %c0_15] : memref<128x128xbf16, #tpu.memory_space<vmem>>, vector<128x128xbf16>
    tpu.vector_store %arg4[%c0_14, %c0_15], %33 {strides = array<i32>} : memref<128x128xbf16, #tpu.memory_space<vmem>>, vector<128x128xbf16>,
    return
  }
}

module attributes {stable_mosaic.version = 11 : i64} {
  func.func @kernel(%arg0: memref<128x256xbf16, #tpu.memory_space<vmem>>, %arg1: memref<256x128xbf16, #tpu.memory_space<vmem>>, %arg2: memref<1x128xf32, #tpu.memory_space<vmem>>, %arg3: memref<1x128xf32, #tpu.memory_space<vmem>>, %arg4: memref<128x128xbf16, #tpu.memory_space<vmem>>) attributes {dimension_semantics = [], scalar_prefetch = 0 : i64, scratch_operands = 0 : i64, tpu.core_type = #tpu.core_type<tc>} {
    %c0 = arith.constant 0 : index
    %c0_0 = arith.constant 0 : index
    %0 = vector.load %arg0[%c0, %c0_0] : memref<128x256xbf16, #tpu.memory_space<vmem>>, vector<128x256xbf16>
    %c0_1 = arith.constant 0 : index
    %c0_2 = arith.constant 0 : index
    %1 = vector.load %arg1[%c0_1, %c0_2] : memref<256x128xbf16, #tpu.memory_space<vmem>>, vector<256x128xbf16>
    %cst = arith.constant dense<0.000000e+00> : vector<128x128xf32>
    %2 = tpu.matmul %0, %1, %cst {dimension_numbers = #tpu.dot_dimension_numbers<[1], [0], [0], [1], [0, 0, 1, 1], [], []>} : vector<128x256xbf16>, vector<256x128xbf16>, vector<128x128xf32> -> vector<128x128xf32>
    %cst_3 = arith.constant 0.000000e+00 : f32
    %3 = vector.broadcast %cst_3 : f32 to vector<128x128xf32>
    %4 = arith.maximumf %2, %3 : vector<128x128xf32>
    %cst_4 = arith.constant dense<0.000000e+00> : vector<128xf32>
    %5 = vector.multi_reduction <add>, %4, %cst_4 [0] : vector<128x128xf32> to vector<128xf32>
    %6 = vector.shape_cast %5 : vector<128xf32> to vector<1x128xf32>
    %cst_5 = arith.constant 7.812500e-03 : f32
    %7 = vector.broadcast %cst_5 : f32 to vector<1x128xf32>
    %8 = arith.mulf %6, %7 : vector<1x128xf32>
    %9 = tpu.iota {dimensions = array<i32: 0>} : vector<128x128xi32>
    %c128_i32 = arith.constant 128 : i32
    %10 = vector.broadcast %c128_i32 : i32 to vector<128x128xi32>
    %11 = arith.cmpi slt, %9, %10 : vector<128x128xi32>
    %12 = vector.broadcast %8 : vector<1x128xf32> to vector<128x128xf32>
    %13 = arith.subf %4, %12 : vector<128x128xf32>
    %cst_6 = arith.constant 0.000000e+00 : f32
    %14 = vector.broadcast %cst_6 : f32 to vector<128x128xf32>
    %15 = arith.select %11, %13, %14 : vector<128x128xi1>, vector<128x128xf32>
    %16 = arith.mulf %15, %15 : vector<128x128xf32>
    %cst_7 = arith.constant dense<0.000000e+00> : vector<128xf32>
    %17 = vector.multi_reduction <add>, %16, %cst_7 [0] : vector<128x128xf32> to vector<128xf32>
    %18 = vector.shape_cast %17 : vector<128xf32> to vector<1x128xf32>
    %cst_8 = arith.constant 7.812500e-03 : f32
    %19 = vector.broadcast %cst_8 : f32 to vector<1x128xf32>
    %20 = arith.mulf %18, %19 : vector<1x128xf32>
    %c0_9 = arith.constant 0 : index
    %c0_10 = arith.constant 0 : index
    %21 = vector.load %arg2[%c0_9, %c0_10] : memref<1x128xf32, #tpu.memory_space<vmem>>, vector<1x128xf32>
    %cst_11 = arith.constant 9.99999974E-6 : f32
    %22 = vector.broadcast %cst_11 : f32 to vector<1x128xf32>
    %23 = arith.addf %20, %22 : vector<1x128xf32>
    %24 = math.rsqrt %23 : vector<1x128xf32>
    %25 = arith.mulf %21, %24 : vector<1x128xf32>
    %c0_12 = arith.constant 0 : index
    %c0_13 = arith.constant 0 : index
    %26 = vector.load %arg3[%c0_12, %c0_13] : memref<1x128xf32, #tpu.memory_space<vmem>>, vector<1x128xf32>
    %27 = arith.mulf %8, %25 : vector<1x128xf32>
    %28 = arith.subf %26, %27 : vector<1x128xf32>
    %29 = vector.broadcast %25 : vector<1x128xf32> to vector<128x128xf32>
    %30 = arith.mulf %4, %29 : vector<128x128xf32>
    %31 = vector.broadcast %28 : vector<1x128xf32> to vector<128x128xf32>
    %32 = arith.addf %30, %31 : vector<128x128xf32>
    %33 = arith.truncf %32 : vector<128x128xf32> to vector<128x128xbf16>
    %c0_14 = arith.constant 0 : index
    %c0_15 = arith.constant 0 : index
    %34 = vector.load %arg4[%c0_14, %c0_15] : memref<128x128xbf16, #tpu.memory_space<vmem>>, vector<128x128xbf16>
    tpu.vector_store %arg4[%c0_14, %c0_15], %33 {strides = array<i32>} : memref<128x128xbf16, #tpu.memory_space<vmem>>, vector<128x128xbf16>,
    return
  }
}

module attributes {stable_mosaic.version = 11 : i64} {
  func.func @kernel(%arg0: memref<32x256xbf16, #tpu.memory_space<vmem>>, %arg1: memref<256x128xbf16, #tpu.memory_space<vmem>>, %arg2: memref<1x128xf32, #tpu.memory_space<vmem>>, %arg3: memref<1x128xf32, #tpu.memory_space<vmem>>, %arg4: memref<32x128xbf16, #tpu.memory_space<vmem>>) attributes {dimension_semantics = [], scalar_prefetch = 0 : i64, scratch_operands = 0 : i64, tpu.core_type = #tpu.core_type<tc>} {
    %c0 = arith.constant 0 : index
    %c0_0 = arith.constant 0 : index
    %0 = vector.load %arg0[%c0, %c0_0] : memref<32x256xbf16, #tpu.memory_space<vmem>>, vector<32x256xbf16>
    %c0_1 = arith.constant 0 : index
    %c0_2 = arith.constant 0 : index
    %1 = vector.load %arg1[%c0_1, %c0_2] : memref<256x128xbf16, #tpu.memory_space<vmem>>, vector<256x128xbf16>
    %cst = arith.constant dense<0.000000e+00> : vector<32x128xf32>
    %2 = tpu.matmul %0, %1, %cst {dimension_numbers = #tpu.dot_dimension_numbers<[1], [0], [0], [1], [0, 0, 1, 1], [], []>} : vector<32x256xbf16>, vector<256x128xbf16>, vector<32x128xf32> -> vector<32x128xf32>
    %cst_3 = arith.constant 0.000000e+00 : f32
    %3 = vector.broadcast %cst_3 : f32 to vector<32x128xf32>
    %4 = arith.maximumf %2, %3 : vector<32x128xf32>
    %cst_4 = arith.constant dense<0.000000e+00> : vector<128xf32>
    %5 = vector.multi_reduction <add>, %4, %cst_4 [0] : vector<32x128xf32> to vector<128xf32>
    %6 = vector.shape_cast %5 : vector<128xf32> to vector<1x128xf32>
    %cst_5 = arith.constant 3.125000e-02 : f32
    %7 = vector.broadcast %cst_5 : f32 to vector<1x128xf32>
    %8 = arith.mulf %6, %7 : vector<1x128xf32>
    %9 = tpu.iota {dimensions = array<i32: 0>} : vector<32x128xi32>
    %c32_i32 = arith.constant 32 : i32
    %10 = vector.broadcast %c32_i32 : i32 to vector<32x128xi32>
    %11 = arith.cmpi slt, %9, %10 : vector<32x128xi32>
    %12 = vector.broadcast %8 : vector<1x128xf32> to vector<32x128xf32>
    %13 = arith.subf %4, %12 : vector<32x128xf32>
    %cst_6 = arith.constant 0.000000e+00 : f32
    %14 = vector.broadcast %cst_6 : f32 to vector<32x128xf32>
    %15 = arith.select %11, %13, %14 : vector<32x128xi1>, vector<32x128xf32>
    %16 = arith.mulf %15, %15 : vector<32x128xf32>
    %cst_7 = arith.constant dense<0.000000e+00> : vector<128xf32>
    %17 = vector.multi_reduction <add>, %16, %cst_7 [0] : vector<32x128xf32> to vector<128xf32>
    %18 = vector.shape_cast %17 : vector<128xf32> to vector<1x128xf32>
    %cst_8 = arith.constant 3.125000e-02 : f32
    %19 = vector.broadcast %cst_8 : f32 to vector<1x128xf32>
    %20 = arith.mulf %18, %19 : vector<1x128xf32>
    %c0_9 = arith.constant 0 : index
    %c0_10 = arith.constant 0 : index
    %21 = vector.load %arg2[%c0_9, %c0_10] : memref<1x128xf32, #tpu.memory_space<vmem>>, vector<1x128xf32>
    %cst_11 = arith.constant 9.99999974E-6 : f32
    %22 = vector.broadcast %cst_11 : f32 to vector<1x128xf32>
    %23 = arith.addf %20, %22 : vector<1x128xf32>
    %24 = math.rsqrt %23 : vector<1x128xf32>
    %25 = arith.mulf %21, %24 : vector<1x128xf32>
    %c0_12 = arith.constant 0 : index
    %c0_13 = arith.constant 0 : index
    %26 = vector.load %arg3[%c0_12, %c0_13] : memref<1x128xf32, #tpu.memory_space<vmem>>, vector<1x128xf32>
    %27 = arith.mulf %8, %25 : vector<1x128xf32>
    %28 = arith.subf %26, %27 : vector<1x128xf32>
    %29 = vector.broadcast %25 : vector<1x128xf32> to vector<32x128xf32>
    %30 = arith.mulf %4, %29 : vector<32x128xf32>
    %31 = vector.broadcast %28 : vector<1x128xf32> to vector<32x128xf32>
    %32 = arith.addf %30, %31 : vector<32x128xf32>
    %33 = arith.truncf %32 : vector<32x128xf32> to vector<32x128xbf16>
    %c0_14 = arith.constant 0 : index
    %c0_15 = arith.constant 0 : index
    %34 = vector.load %arg4[%c0_14, %c0_15] : memref<32x128xbf16, #tpu.memory_space<vmem>>, vector<32x128xbf16>
    tpu.vector_store %arg4[%c0_14, %c0_15], %33 {strides = array<i32>} : memref<32x128xbf16, #tpu.memory_space<vmem>>, vector<32x128xbf16>,
    return
  }
}

module attributes {stable_mosaic.version = 11 : i64} {
  func.func @head_kernel(%arg0: memref<2x16x128xbf16, #tpu.memory_space<vmem>>, %arg1: memref<128x128xf32, #tpu.memory_space<vmem>>, %arg2: memref<1x128xf32, #tpu.memory_space<vmem>>, %arg3: memref<2x128xf32, #tpu.memory_space<vmem>>) attributes {dimension_semantics = [], scalar_prefetch = 0 : i64, scratch_operands = 0 : i64, tpu.core_type = #tpu.core_type<tc>} {
    %c0 = arith.constant 0 : index
    %c0_0 = arith.constant 0 : index
    %c0_1 = arith.constant 0 : index
    %0 = vector.load %arg0[%c0, %c0_0, %c0_1] : memref<2x16x128xbf16, #tpu.memory_space<vmem>>, vector<2x16x128xbf16>
    %1 = arith.extf %0 : vector<2x16x128xbf16> to vector<2x16x128xf32>
    %cst = arith.constant dense<0xFF800000> : vector<2x128xf32>
    %2 = vector.multi_reduction <maximumf>, %1, %cst [1] : vector<2x16x128xf32> to vector<2x128xf32>
    %c0_2 = arith.constant 0 : index
    %c0_3 = arith.constant 0 : index
    %3 = vector.load %arg1[%c0_2, %c0_3] : memref<128x128xf32, #tpu.memory_space<vmem>>, vector<128x128xf32>
    %cst_4 = arith.constant dense<0.000000e+00> : vector<2x128xf32>
    %4 = tpu.matmul %2, %3, %cst_4 {dimension_numbers = #tpu.dot_dimension_numbers<[1], [0], [0], [1], [0, 0, 1, 1], [], []>} : vector<2x128xf32>, vector<128x128xf32>, vector<2x128xf32> -> vector<2x128xf32>
    %c0_5 = arith.constant 0 : index
    %c0_6 = arith.constant 0 : index
    %5 = vector.load %arg2[%c0_5, %c0_6] : memref<1x128xf32, #tpu.memory_space<vmem>>, vector<1x128xf32>
    %6 = vector.broadcast %5 : vector<1x128xf32> to vector<2x128xf32>
    %7 = arith.addf %4, %6 : vector<2x128xf32>
    %8 = tpu.iota {dimensions = array<i32: 1>} : vector<2x128xi32>
    %c10_i32 = arith.constant 10 : i32
    %9 = vector.broadcast %c10_i32 : i32 to vector<2x128xi32>
    %10 = arith.cmpi slt, %8, %9 : vector<2x128xi32>
    %cst_7 = arith.constant -1.000000e+30 : f32
    %11 = vector.broadcast %cst_7 : f32 to vector<2x128xf32>
    %12 = arith.select %10, %7, %11 : vector<2x128xi1>, vector<2x128xf32>
    %cst_8 = arith.constant dense<0xFF800000> : vector<2xf32>
    %13 = vector.multi_reduction <maximumf>, %12, %cst_8 [1] : vector<2x128xf32> to vector<2xf32>
    %14 = vector.shape_cast %13 : vector<2xf32> to vector<2x1xf32>
    %15 = vector.broadcast %14 : vector<2x1xf32> to vector<2x128xf32>
    %16 = arith.subf %12, %15 : vector<2x128xf32>
    %17 = math.exp %16 : vector<2x128xf32>
    %cst_9 = arith.constant dense<0.000000e+00> : vector<2xf32>
    %18 = vector.multi_reduction <add>, %17, %cst_9 [1] : vector<2x128xf32> to vector<2xf32>
    %19 = vector.shape_cast %18 : vector<2xf32> to vector<2x1xf32>
    %20 = vector.broadcast %19 : vector<2x1xf32> to vector<2x128xf32>
    %21 = arith.divf %17, %20 : vector<2x128xf32>
    %c0_10 = arith.constant 0 : index
    %c0_11 = arith.constant 0 : index
    %22 = vector.load %arg3[%c0_10, %c0_11] : memref<2x128xf32, #tpu.memory_space<vmem>>, vector<2x128xf32>
    tpu.vector_store %arg3[%c0_10, %c0_11], %21 {strides = array<i32>} : memref<2x128xf32, #tpu.memory_space<vmem>>, vector<2x128xf32>,
    return
  }
}

module attributes {stable_mosaic.version = 11 : i64} {
  func.func @kernel(%arg0: memref<32x384xbf16, #tpu.memory_space<vmem>>, %arg1: memref<384x128xbf16, #tpu.memory_space<vmem>>, %arg2: memref<1x128xf32, #tpu.memory_space<vmem>>, %arg3: memref<1x128xf32, #tpu.memory_space<vmem>>, %arg4: memref<32x128xbf16, #tpu.memory_space<vmem>>) attributes {dimension_semantics = [], scalar_prefetch = 0 : i64, scratch_operands = 0 : i64, tpu.core_type = #tpu.core_type<tc>} {
    %c0 = arith.constant 0 : index
    %c0_0 = arith.constant 0 : index
    %0 = vector.load %arg0[%c0, %c0_0] : memref<32x384xbf16, #tpu.memory_space<vmem>>, vector<32x384xbf16>
    %c0_1 = arith.constant 0 : index
    %c0_2 = arith.constant 0 : index
    %1 = vector.load %arg1[%c0_1, %c0_2] : memref<384x128xbf16, #tpu.memory_space<vmem>>, vector<384x128xbf16>
    %cst = arith.constant dense<0.000000e+00> : vector<32x128xf32>
    %2 = tpu.matmul %0, %1, %cst {dimension_numbers = #tpu.dot_dimension_numbers<[1], [0], [0], [1], [0, 0, 1, 1], [], []>} : vector<32x384xbf16>, vector<384x128xbf16>, vector<32x128xf32> -> vector<32x128xf32>
    %cst_3 = arith.constant 0.000000e+00 : f32
    %3 = vector.broadcast %cst_3 : f32 to vector<32x128xf32>
    %4 = arith.maximumf %2, %3 : vector<32x128xf32>
    %cst_4 = arith.constant dense<0.000000e+00> : vector<128xf32>
    %5 = vector.multi_reduction <add>, %4, %cst_4 [0] : vector<32x128xf32> to vector<128xf32>
    %6 = vector.shape_cast %5 : vector<128xf32> to vector<1x128xf32>
    %cst_5 = arith.constant 3.125000e-02 : f32
    %7 = vector.broadcast %cst_5 : f32 to vector<1x128xf32>
    %8 = arith.mulf %6, %7 : vector<1x128xf32>
    %9 = tpu.iota {dimensions = array<i32: 0>} : vector<32x128xi32>
    %c32_i32 = arith.constant 32 : i32
    %10 = vector.broadcast %c32_i32 : i32 to vector<32x128xi32>
    %11 = arith.cmpi slt, %9, %10 : vector<32x128xi32>
    %12 = vector.broadcast %8 : vector<1x128xf32> to vector<32x128xf32>
    %13 = arith.subf %4, %12 : vector<32x128xf32>
    %cst_6 = arith.constant 0.000000e+00 : f32
    %14 = vector.broadcast %cst_6 : f32 to vector<32x128xf32>
    %15 = arith.select %11, %13, %14 : vector<32x128xi1>, vector<32x128xf32>
    %16 = arith.mulf %15, %15 : vector<32x128xf32>
    %cst_7 = arith.constant dense<0.000000e+00> : vector<128xf32>
    %17 = vector.multi_reduction <add>, %16, %cst_7 [0] : vector<32x128xf32> to vector<128xf32>
    %18 = vector.shape_cast %17 : vector<128xf32> to vector<1x128xf32>
    %cst_8 = arith.constant 3.125000e-02 : f32
    %19 = vector.broadcast %cst_8 : f32 to vector<1x128xf32>
    %20 = arith.mulf %18, %19 : vector<1x128xf32>
    %c0_9 = arith.constant 0 : index
    %c0_10 = arith.constant 0 : index
    %21 = vector.load %arg2[%c0_9, %c0_10] : memref<1x128xf32, #tpu.memory_space<vmem>>, vector<1x128xf32>
    %cst_11 = arith.constant 9.99999974E-6 : f32
    %22 = vector.broadcast %cst_11 : f32 to vector<1x128xf32>
    %23 = arith.addf %20, %22 : vector<1x128xf32>
    %24 = math.rsqrt %23 : vector<1x128xf32>
    %25 = arith.mulf %21, %24 : vector<1x128xf32>
    %c0_12 = arith.constant 0 : index
    %c0_13 = arith.constant 0 : index
    %26 = vector.load %arg3[%c0_12, %c0_13] : memref<1x128xf32, #tpu.memory_space<vmem>>, vector<1x128xf32>
    %27 = arith.mulf %8, %25 : vector<1x128xf32>
    %28 = arith.subf %26, %27 : vector<1x128xf32>
    %29 = vector.broadcast %25 : vector<1x128xf32> to vector<32x128xf32>
    %30 = arith.mulf %4, %29 : vector<32x128xf32>
    %31 = vector.broadcast %28 : vector<1x128xf32> to vector<32x128xf32>
    %32 = arith.addf %30, %31 : vector<32x128xf32>
    %33 = arith.truncf %32 : vector<32x128xf32> to vector<32x128xbf16>
    %c0_14 = arith.constant 0 : index
    %c0_15 = arith.constant 0 : index
    %34 = vector.load %arg4[%c0_14, %c0_15] : memref<32x128xbf16, #tpu.memory_space<vmem>>, vector<32x128xbf16>
    tpu.vector_store %arg4[%c0_14, %c0_15], %33 {strides = array<i32>} : memref<32x128xbf16, #tpu.memory_space<vmem>>, vector<32x128xbf16>,
    return
  }
}

</mosaic_0001>

<bundles_post_ra>
// kernel: conv_bn_net_forward.6
= control target key start
LH: loop header
LB: loop body
LE: loop exit
PB: predicated region body
PF: predicated region fallthrough
CT: control target
= control target key end

     0   :  { %s1360_s1 = inlined_call_operand.vmem [shape: bf16[128,128], index: 1, kind: input, shape index: {}]   ;;  %s1361_s2 = inlined_call_operand.vmem [shape: f32[1,128], index: 2, kind: input, shape index: {}]   ;;  %s1362_s0 = inlined_call_operand.vmem [shape: bf16[512,128], index: 0, kind: input, shape index: {}]   ;;  %s1363_s3 = inlined_call_operand.vmem [shape: bf16[512,128], index: 3, kind: output, shape index: {}]  }
   0x1   :  { %v838_v0 = vld [vmem:[%s1360_s1 + $0x38] sm:$0xff]  ;;  %v837_v1 = vld [vmem:[%s1360_s1 + $0x30] sm:$0xff]  ;;  %v836_v2 = vld [vmem:[%s1360_s1 + $0x28] sm:$0xff] }
   0x2   :  { %338 = vmatpush.bf16.msra.mxu0 %v838_v0  ;;  %1030 = vmatpush.bf16.msra.mxu1 %v838_v0  ;;  %v835_v3 = vld [vmem:[%s1360_s1 + $0x20] sm:$0xff]  ;;  %v834_v4 = vld [vmem:[%s1360_s1 + $0x18] sm:$0xff]  ;;  %v833_v5 = vld [vmem:[%s1360_s1 + $0x10] sm:$0xff] }
   0x3   :  { %1031 = vmatpush.bf16.msra.mxu2 %v838_v0  ;;  %1032 = vmatpush.bf16.msra.mxu3 %v838_v0  ;;  %v832_v6 = vld [vmem:[%s1360_s1 + $0x8] sm:$0xff]  ;;  %v831_v7 = vld [vmem:[%s1360_s1] sm:$0xff]  ;;  %v801_v16 = vld [vmem:[%s1362_s0 + $0x10] sm:$0xff] }
   0x4   :  { %v799_v8 = vld [vmem:[%s1362_s0] sm:$0xff]  ;;  %v800_v12 = vld [vmem:[%s1362_s0 + $0x8] sm:$0xff]  ;;  %v809_v17 = vld [vmem:[%s1362_s0 + $0x50] sm:$0xff] }
   0x5   :  { %v807_v9 = vld [vmem:[%s1362_s0 + $0x40] sm:$0xff]  ;;  %v808_v13 = vld [vmem:[%s1362_s0 + $0x48] sm:$0xff]  ;;  %v817_v18 = vld [vmem:[%s1362_s0 + $0x90] sm:$0xff] }
   0x6   :  { %339 = vmatpush.bf16.msra.mxu0 %v837_v1  ;;  %1033 = vmatpush.bf16.msra.mxu1 %v837_v1  ;;  %v815_v10 = vld [vmem:[%s1362_s0 + $0x80] sm:$0xff]  ;;  %v816_v14 = vld [vmem:[%s1362_s0 + $0x88] sm:$0xff]  ;;  %v825_v19 = vld [vmem:[%s1362_s0 + $0xd0] sm:$0xff] }
   0x7   :  { %1034 = vmatpush.bf16.msra.mxu2 %v837_v1  ;;  %1035 = vmatpush.bf16.msra.mxu3 %v837_v1  ;;  %v823_v11 = vld [vmem:[%s1362_s0 + $0xc0] sm:$0xff]  ;;  %v824_v15 = vld [vmem:[%s1362_s0 + $0xc8] sm:$0xff]  ;;  %v802_v20 = vld [vmem:[%s1362_s0 + $0x18] sm:$0xff] }
   0x8   :  { %v810_v21 = vld [vmem:[%s1362_s0 + $0x58] sm:$0xff]  ;;  %v803_v24 = vld [vmem:[%s1362_s0 + $0x20] sm:$0xff]  ;;  %v804_v28 = vld [vmem:[%s1362_s0 + $0x28] sm:$0xff] }
   0x9   :  { %v818_v22 = vld [vmem:[%s1362_s0 + $0x98] sm:$0xff]  ;;  %v811_v25 = vld [vmem:[%s1362_s0 + $0x60] sm:$0xff]  ;;  %v812_v29 = vld [vmem:[%s1362_s0 + $0x68] sm:$0xff] }
   0xa   :  { %340 = vmatpush.bf16.msra.mxu0 %v836_v2  ;;  %1036 = vmatpush.bf16.msra.mxu1 %v836_v2  ;;  %v826_v23 = vld [vmem:[%s1362_s0 + $0xd8] sm:$0xff]  ;;  %v819_v26 = vld [vmem:[%s1362_s0 + $0xa0] sm:$0xff]  ;;  %v820_v30 = vld [vmem:[%s1362_s0 + $0xa8] sm:$0xff] }
   0xb   :  { %1037 = vmatpush.bf16.msra.mxu2 %v836_v2  ;;  %1038 = vmatpush.bf16.msra.mxu3 %v836_v2  ;;  %v827_v27 = vld [vmem:[%s1362_s0 + $0xe0] sm:$0xff]  ;;  %v828_v31 = vld [vmem:[%s1362_s0 + $0xe8] sm:$0xff]  ;;  %v805_v32 = vld [vmem:[%s1362_s0 + $0x30] sm:$0xff] }
   0xc   :  { %v813_v33 = vld [vmem:[%s1362_s0 + $0x70] sm:$0xff]  ;;  %v806_v36 = vld [vmem:[%s1362_s0 + $0x38] sm:$0xff]  ;;  %v1198_v42 = vld [vmem:[%s1361_s2] ss:$0 sm:$0xff] }
   0xd   :  { %v821_v34 = vld [vmem:[%s1362_s0 + $0xb0] sm:$0xff]  ;;  %v814_v37 = vld [vmem:[%s1362_s0 + $0x78] sm:$0xff] }
   0xe   :  { %341 = vmatpush.bf16.msra.mxu0 %v835_v3  ;;  %1039 = vmatpush.bf16.msra.mxu1 %v835_v3  ;;  %v829_v35 = vld [vmem:[%s1362_s0 + $0xf0] sm:$0xff]  ;;  %v822_v38 = vld [vmem:[%s1362_s0 + $0xb8] sm:$0xff] }
   0xf   :  { %1040 = vmatpush.bf16.msra.mxu2 %v835_v3  ;;  %1041 = vmatpush.bf16.msra.mxu3 %v835_v3  ;;  %v830_v39 = vld [vmem:[%s1362_s0 + $0xf8] sm:$0xff] }
  0x12   :  { %342 = vmatpush.bf16.msra.mxu0 %v834_v4  ;;  %1042 = vmatpush.bf16.msra.mxu1 %v834_v4 }
  0x13   :  { %1043 = vmatpush.bf16.msra.mxu2 %v834_v4  ;;  %1044 = vmatpush.bf16.msra.mxu3 %v834_v4 }
  0x16   :  { %343 = vmatpush.bf16.msra.mxu0 %v833_v5  ;;  %1045 = vmatpush.bf16.msra.mxu1 %v833_v5 }
  0x17   :  { %1046 = vmatpush.bf16.msra.mxu2 %v833_v5  ;;  %1047 = vmatpush.bf16.msra.mxu3 %v833_v5 }
  0x1a   :  { %344 = vmatpush.bf16.msra.mxu0 %v832_v6  ;;  %1048 = vmatpush.bf16.msra.mxu1 %v832_v6 }
  0x1b   :  { %1049 = vmatpush.bf16.msra.mxu2 %v832_v6  ;;  %1050 = vmatpush.bf16.msra.mxu3 %v832_v6 }
  0x1e   :  { %345 = vmatpush.bf16.msra.mxu0 %v831_v7  ;;  %1051 = vmatpush.bf16.msra.mxu1 %v831_v7 }
  0x1f   :  { %1052 = vmatpush.bf16.msra.mxu2 %v831_v7  ;;  %1053 = vmatpush.bf16.msra.mxu3 %v831_v7 }
  0x21   :  { %346 = vmatmul.bf16.vlgmr.msra.gmra.mxu0 %v799_v8  ;;  %386 = vmatmul.bf16.vlgmr.msra.gmra.mxu1 %v807_v9 }
  0x22   :  { %426 = vmatmul.bf16.vlgmr.msra.gmra.mxu2 %v815_v10  ;;  %466 = vmatmul.bf16.vlgmr.msra.gmra.mxu3 %v823_v11 }
  0x31   :  { %351 = vmatmul.bf16.gmra.mxu0 %v800_v12  ;;  %391 = vmatmul.bf16.gmra.mxu1 %v808_v13 }
  0x32   :  { %431 = vmatmul.bf16.gmra.mxu2 %v816_v14  ;;  %471 = vmatmul.bf16.gmra.mxu3 %v824_v15 }
  0x41   :  { %356 = vmatmul.bf16.gmra.mxu0 %v801_v16  ;;  %396 = vmatmul.bf16.gmra.mxu1 %v809_v17 }
  0x42   :  { %436 = vmatmul.bf16.gmra.mxu2 %v817_v18  ;;  %476 = vmatmul.bf16.gmra.mxu3 %v825_v19 }
  0x51   :  { %361 = vmatmul.bf16.gmra.mxu0 %v802_v20  ;;  %401 = vmatmul.bf16.gmra.mxu1 %v810_v21 }
  0x52   :  { %441 = vmatmul.bf16.gmra.mxu2 %v818_v22  ;;  %481 = vmatmul.bf16.gmra.mxu3 %v826_v23 }
  0x61   :  { %366 = vmatmul.bf16.gmra.mxu0 %v803_v24  ;;  %406 = vmatmul.bf16.gmra.mxu1 %v811_v25 }
  0x62   :  { %446 = vmatmul.bf16.gmra.mxu2 %v819_v26  ;;  %486 = vmatmul.bf16.gmra.mxu3 %v827_v27 }
  0x71   :  { %371 = vmatmul.bf16.gmra.mxu0 %v804_v28  ;;  %411 = vmatmul.bf16.gmra.mxu1 %v812_v29 }
  0x72   :  { %451 = vmatmul.bf16.gmra.mxu2 %v820_v30  ;;  %491 = vmatmul.bf16.gmra.mxu3 %v828_v31 }
  0x81   :  { %376 = vmatmul.bf16.gmra.mxu0 %v805_v32  ;;  %416 = vmatmul.bf16.gmra.mxu1 %v813_v33 }
  0x82   :  { %456 = vmatmul.bf16.gmra.mxu2 %v821_v34  ;;  %496 = vmatmul.bf16.gmra.mxu3 %v829_v35 }
  0x91   :  { %381 = vmatmul.bf16.gmra.mxu0 %v806_v36  ;;  %421 = vmatmul.bf16.gmra.mxu1 %v814_v37 }
  0x92   :  { %461 = vmatmul.bf16.gmra.mxu2 %v822_v38  ;;  %501 = vmatmul.bf16.gmra.mxu3 %v830_v39 }
  0x9e   :  { %v347_v40 = vpop.f32.mrf.mxu0  ;;  %v387_v41 = vpop.f32.mrf.mxu1 }
  0x9f   :  { %v348_v47 = vadd.f32 %v1198_v42, %v347_v40  ;;  %v388_v48 = vadd.f32 %v1198_v42, %v387_v41 }
  0xa5   :  { %v427_v43 = vpop.f32.mrf.mxu2  ;;  %v467_v44 = vpop.f32.mrf.mxu3 }
  0xa6   :  { %v349_v45 = vpop.f32.mrf.mxu0  ;;  %v389_v46 = vpop.f32.mrf.mxu1  ;;  %v428_v55 = vadd.f32 %v1198_v42, %v427_v43  ;;  %v468_v56 = vadd.f32 %v1198_v42, %v467_v44 }
  0xa7   :  { %v350_v49 = vadd.f32 %v1198_v42, %v349_v45  ;;  %v390_v50 = vadd.f32 %v1198_v42, %v389_v46 }
  0xa9   :  { %v842_v51 = vpack.c.bf16 %v350_v49, %v348_v47  ;;  %v882_v52 = vpack.c.bf16 %v390_v50, %v388_v48 }
  0xab   :  { %843 = vst [vmem:[%s1363_s3] sm:$0xff] %v842_v51  }
  0xac   :  { %1006 = vst [vmem:[%s1363_s3 + $0x40] sm:$0xff] %v882_v52  }
  0xad   :  { %v429_v53 = vpop.f32.mrf.mxu2  ;;  %v469_v54 = vpop.f32.mrf.mxu3 }
  0xae   :  { %v430_v57 = vadd.f32 %v1198_v42, %v429_v53  ;;  %v470_v58 = vadd.f32 %v1198_v42, %v469_v54  ;;  %v352_v59 = vpop.f32.mrf.mxu0  ;;  %v392_v60 = vpop.f32.mrf.mxu1 }
  0xaf   :  { %v353_v3 = vadd.f32 %v1198_v42, %v352_v59  ;;  %v393_v4 = vadd.f32 %v1198_v42, %v392_v60 }
  0xb0   :  { %v922_v61 = vpack.c.bf16 %v430_v57, %v428_v55  ;;  %v962_v62 = vpack.c.bf16 %v470_v58, %v468_v56 }
  0xb2   :  { %1014 = vst [vmem:[%s1363_s3 + $0x80] sm:$0xff] %v922_v61  }
  0xb3   :  { %1022 = vst [vmem:[%s1363_s3 + $0xc0] sm:$0xff] %v962_v62  }
  0xb5   :  { %v432_v63 = vpop.f32.mrf.mxu2  ;;  %v472_v0 = vpop.f32.mrf.mxu3 }
  0xb6   :  { %v354_v1 = vpop.f32.mrf.mxu0  ;;  %v394_v2 = vpop.f32.mrf.mxu1  ;;  %v433_v11 = vadd.f32 %v1198_v42, %v432_v63  ;;  %v473_v12 = vadd.f32 %v1198_v42, %v472_v0 }
  0xb7   :  { %v355_v5 = vadd.f32 %v1198_v42, %v354_v1  ;;  %v395_v6 = vadd.f32 %v1198_v42, %v394_v2 }
  0xb9   :  { %v847_v7 = vpack.c.bf16 %v355_v5, %v353_v3  ;;  %v887_v8 = vpack.c.bf16 %v395_v6, %v393_v4 }
  0xbb   :  { %999 = vst [vmem:[%s1363_s3 + $0x8] sm:$0xff] %v847_v7  }
  0xbc   :  { %1007 = vst [vmem:[%s1363_s3 + $0x48] sm:$0xff] %v887_v8  }
  0xbd   :  { %v434_v9 = vpop.f32.mrf.mxu2  ;;  %v474_v10 = vpop.f32.mrf.mxu3 }
  0xbe   :  { %v435_v13 = vadd.f32 %v1198_v42, %v434_v9  ;;  %v475_v14 = vadd.f32 %v1198_v42, %v474_v10  ;;  %v357_v15 = vpop.f32.mrf.mxu0  ;;  %v397_v16 = vpop.f32.mrf.mxu1 }
  0xbf   :  { %v358_v23 = vadd.f32 %v1198_v42, %v357_v15  ;;  %v398_v24 = vadd.f32 %v1198_v42, %v397_v16 }
  0xc0   :  { %v927_v17 = vpack.c.bf16 %v435_v13, %v433_v11  ;;  %v967_v18 = vpack.c.bf16 %v475_v14, %v473_v12 }
  0xc2   :  { %1015 = vst [vmem:[%s1363_s3 + $0x88] sm:$0xff] %v927_v17  }
  0xc3   :  { %1023 = vst [vmem:[%s1363_s3 + $0xc8] sm:$0xff] %v967_v18  }
  0xc5   :  { %v437_v19 = vpop.f32.mrf.mxu2  ;;  %v477_v20 = vpop.f32.mrf.mxu3 }
  0xc6   :  { %v359_v21 = vpop.f32.mrf.mxu0  ;;  %v399_v22 = vpop.f32.mrf.mxu1  ;;  %v438_v31 = vadd.f32 %v1198_v42, %v437_v19  ;;  %v478_v32 = vadd.f32 %v1198_v42, %v477_v20 }
  0xc7   :  { %v360_v25 = vadd.f32 %v1198_v42, %v359_v21  ;;  %v400_v26 = vadd.f32 %v1198_v42, %v399_v22 }
  0xc9   :  { %v852_v27 = vpack.c.bf16 %v360_v25, %v358_v23  ;;  %v892_v28 = vpack.c.bf16 %v400_v26, %v398_v24 }
  0xcb   :  { %1000 = vst [vmem:[%s1363_s3 + $0x10] sm:$0xff] %v852_v27  }
  0xcc   :  { %1008 = vst [vmem:[%s1363_s3 + $0x50] sm:$0xff] %v892_v28  }
  0xcd   :  { %v439_v29 = vpop.f32.mrf.mxu2  ;;  %v479_v30 = vpop.f32.mrf.mxu3 }
  0xce   :  { %v440_v33 = vadd.f32 %v1198_v42, %v439_v29  ;;  %v480_v34 = vadd.f32 %v1198_v42, %v479_v30  ;;  %v362_v35 = vpop.f32.mrf.mxu0  ;;  %v402_v36 = vpop.f32.mrf.mxu1 }
  0xcf   :  { %v363_v44 = vadd.f32 %v1198_v42, %v362_v35  ;;  %v403_v45 = vadd.f32 %v1198_v42, %v402_v36 }
  0xd0   :  { %v932_v37 = vpack.c.bf16 %v440_v33, %v438_v31  ;;  %v972_v38 = vpack.c.bf16 %v480_v34, %v478_v32 }
  0xd2   :  { %1016 = vst [vmem:[%s1363_s3 + $0x90] sm:$0xff] %v932_v37  }
  0xd3   :  { %1024 = vst [vmem:[%s1363_s3 + $0xd0] sm:$0xff] %v972_v38  }
  0xd5   :  { %v442_v39 = vpop.f32.mrf.mxu2  ;;  %v482_v40 = vpop.f32.mrf.mxu3 }
  0xd6   :  { %v364_v41 = vpop.f32.mrf.mxu0  ;;  %v404_v43 = vpop.f32.mrf.mxu1  ;;  %v443_v52 = vadd.f32 %v1198_v42, %v442_v39  ;;  %v483_v53 = vadd.f32 %v1198_v42, %v482_v40 }
  0xd7   :  { %v365_v46 = vadd.f32 %v1198_v42, %v364_v41  ;;  %v405_v47 = vadd.f32 %v1198_v42, %v404_v43 }
  0xd9   :  { %v857_v48 = vpack.c.bf16 %v365_v46, %v363_v44  ;;  %v897_v49 = vpack.c.bf16 %v405_v47, %v403_v45 }
  0xdb   :  { %1001 = vst [vmem:[%s1363_s3 + $0x18] sm:$0xff] %v857_v48  }
  0xdc   :  { %1009 = vst [vmem:[%s1363_s3 + $0x58] sm:$0xff] %v897_v49  }
  0xdd   :  { %v444_v50 = vpop.f32.mrf.mxu2  ;;  %v484_v51 = vpop.f32.mrf.mxu3 }
  0xde   :  { %v445_v54 = vadd.f32 %v1198_v42, %v444_v50  ;;  %v485_v55 = vadd.f32 %v1198_v42, %v484_v51  ;;  %v367_v56 = vpop.f32.mrf.mxu0  ;;  %v407_v57 = vpop.f32.mrf.mxu1 }
  0xdf   :  { %v368_v0 = vadd.f32 %v1198_v42, %v367_v56  ;;  %v408_v1 = vadd.f32 %v1198_v42, %v407_v57 }
  0xe0   :  { %v937_v58 = vpack.c.bf16 %v445_v54, %v443_v52  ;;  %v977_v59 = vpack.c.bf16 %v485_v55, %v483_v53 }
  0xe2   :  { %1017 = vst [vmem:[%s1363_s3 + $0x98] sm:$0xff] %v937_v58  }
  0xe3   :  { %1025 = vst [vmem:[%s1363_s3 + $0xd8] sm:$0xff] %v977_v59  }
  0xe5   :  { %v447_v60 = vpop.f32.mrf.mxu2  ;;  %v487_v61 = vpop.f32.mrf.mxu3 }
  0xe6   :  { %v369_v62 = vpop.f32.mrf.mxu0  ;;  %v409_v63 = vpop.f32.mrf.mxu1  ;;  %v448_v8 = vadd.f32 %v1198_v42, %v447_v60  ;;  %v488_v9 = vadd.f32 %v1198_v42, %v487_v61 }
  0xe7   :  { %v370_v2 = vadd.f32 %v1198_v42, %v369_v62  ;;  %v410_v3 = vadd.f32 %v1198_v42, %v409_v63 }
  0xe9   :  { %v862_v4 = vpack.c.bf16 %v370_v2, %v368_v0  ;;  %v902_v5 = vpack.c.bf16 %v410_v3, %v408_v1 }
  0xeb   :  { %1002 = vst [vmem:[%s1363_s3 + $0x20] sm:$0xff] %v862_v4  }
  0xec   :  { %1010 = vst [vmem:[%s1363_s3 + $0x60] sm:$0xff] %v902_v5  }
  0xed   :  { %v449_v6 = vpop.f32.mrf.mxu2  ;;  %v489_v7 = vpop.f32.mrf.mxu3 }
  0xee   :  { %v450_v10 = vadd.f32 %v1198_v42, %v449_v6  ;;  %v490_v11 = vadd.f32 %v1198_v42, %v489_v7  ;;  %v372_v12 = vpop.f32.mrf.mxu0  ;;  %v412_v13 = vpop.f32.mrf.mxu1 }
  0xef   :  { %v373_v20 = vadd.f32 %v1198_v42, %v372_v12  ;;  %v413_v21 = vadd.f32 %v1198_v42, %v412_v13 }
  0xf0   :  { %v942_v14 = vpack.c.bf16 %v450_v10, %v448_v8  ;;  %v982_v15 = vpack.c.bf16 %v490_v11, %v488_v9 }
  0xf2   :  { %1018 = vst [vmem:[%s1363_s3 + $0xa0] sm:$0xff] %v942_v14  }
  0xf3   :  { %1026 = vst [vmem:[%s1363_s3 + $0xe0] sm:$0xff] %v982_v15  }
  0xf5   :  { %v452_v16 = vpop.f32.mrf.mxu2  ;;  %v492_v17 = vpop.f32.mrf.mxu3 }
  0xf6   :  { %v374_v18 = vpop.f32.mrf.mxu0  ;;  %v414_v19 = vpop.f32.mrf.mxu1  ;;  %v453_v28 = vadd.f32 %v1198_v42, %v452_v16  ;;  %v493_v29 = vadd.f32 %v1198_v42, %v492_v17 }
  0xf7   :  { %v375_v22 = vadd.f32 %v1198_v42, %v374_v18  ;;  %v415_v23 = vadd.f32 %v1198_v42, %v414_v19 }
  0xf9   :  { %v867_v24 = vpack.c.bf16 %v375_v22, %v373_v20  ;;  %v907_v25 = vpack.c.bf16 %v415_v23, %v413_v21 }
  0xfb   :  { %1003 = vst [vmem:[%s1363_s3 + $0x28] sm:$0xff] %v867_v24  }
  0xfc   :  { %1011 = vst [vmem:[%s1363_s3 + $0x68] sm:$0xff] %v907_v25  }
  0xfd   :  { %v454_v26 = vpop.f32.mrf.mxu2  ;;  %v494_v27 = vpop.f32.mrf.mxu3 }
  0xfe   :  { %v455_v30 = vadd.f32 %v1198_v42, %v454_v26  ;;  %v495_v31 = vadd.f32 %v1198_v42, %v494_v27  ;;  %v377_v32 = vpop.f32.mrf.mxu0  ;;  %v417_v33 = vpop.f32.mrf.mxu1 }
  0xff   :  { %v378_v40 = vadd.f32 %v1198_v42, %v377_v32  ;;  %v418_v41 = vadd.f32 %v1198_v42, %v417_v33 }
 0x100   :  { %v947_v34 = vpack.c.bf16 %v455_v30, %v453_v28  ;;  %v987_v35 = vpack.c.bf16 %v495_v31, %v493_v29 }
 0x102   :  { %1019 = vst [vmem:[%s1363_s3 + $0xa8] sm:$0xff] %v947_v34  }
 0x103   :  { %1027 = vst [vmem:[%s1363_s3 + $0xe8] sm:$0xff] %v987_v35  }
 0x105   :  { %v457_v36 = vpop.f32.mrf.mxu2  ;;  %v497_v37 = vpop.f32.mrf.mxu3 }
 0x106   :  { %v379_v38 = vpop.f32.mrf.mxu0  ;;  %v419_v39 = vpop.f32.mrf.mxu1  ;;  %v458_v49 = vadd.f32 %v1198_v42, %v457_v36  ;;  %v498_v50 = vadd.f32 %v1198_v42, %v497_v37 }
 0x107   :  { %v380_v43 = vadd.f32 %v1198_v42, %v379_v38  ;;  %v420_v44 = vadd.f32 %v1198_v42, %v419_v39 }
 0x109   :  { %v872_v45 = vpack.c.bf16 %v380_v43, %v378_v40  ;;  %v912_v46 = vpack.c.bf16 %v420_v44, %v418_v41 }
 0x10b   :  { %1004 = vst [vmem:[%s1363_s3 + $0x30] sm:$0xff] %v872_v45  }
 0x10c   :  { %1012 = vst [vmem:[%s1363_s3 + $0x70] sm:$0xff] %v912_v46  }
 0x10d   :  { %v459_v47 = vpop.f32.mrf.mxu2  ;;  %v499_v48 = vpop.f32.mrf.mxu3 }
 0x10e   :  { %v460_v51 = vadd.f32 %v1198_v42, %v459_v47  ;;  %v500_v52 = vadd.f32 %v1198_v42, %v499_v48  ;;  %v382_v53 = vpop.f32.mrf.mxu0  ;;  %v422_v54 = vpop.f32.mrf.mxu1 }
 0x10f   :  { %v383_v61 = vadd.f32 %v1198_v42, %v382_v53  ;;  %v423_v62 = vadd.f32 %v1198_v42, %v422_v54 }
 0x110   :  { %v952_v55 = vpack.c.bf16 %v460_v51, %v458_v49  ;;  %v992_v56 = vpack.c.bf16 %v500_v52, %v498_v50 }
 0x112   :  { %1020 = vst [vmem:[%s1363_s3 + $0xb0] sm:$0xff] %v952_v55  }
 0x113   :  { %1028 = vst [vmem:[%s1363_s3 + $0xf0] sm:$0xff] %v992_v56  }
 0x115   :  { %v462_v57 = vpop.f32.mrf.mxu2  ;;  %v502_v58 = vpop.f32.mrf.mxu3 }
 0x116   :  { %v384_v59 = vpop.f32.mrf.mxu0  ;;  %v424_v60 = vpop.f32.mrf.mxu1  ;;  %v463_v5 = vadd.f32 %v1198_v42, %v462_v57  ;;  %v503_v6 = vadd.f32 %v1198_v42, %v502_v58 }
 0x117   :  { %v385_v63 = vadd.f32 %v1198_v42, %v384_v59  ;;  %v425_v0 = vadd.f32 %v1198_v42, %v424_v60 }
 0x119   :  { %v877_v1 = vpack.c.bf16 %v385_v63, %v383_v61  ;;  %v917_v2 = vpack.c.bf16 %v425_v0, %v423_v62 }
 0x11b   :  { %1005 = vst [vmem:[%s1363_s3 + $0x38] sm:$0xff] %v877_v1  }
 0x11c   :  { %1013 = vst [vmem:[%s1363_s3 + $0x78] sm:$0xff] %v917_v2  }
 0x11d   :  { %v464_v3 = vpop.f32.mrf.mxu2  ;;  %v504_v4 = vpop.f32.mrf.mxu3 }
 0x11e   :  { %v465_v7 = vadd.f32 %v1198_v42, %v464_v3  ;;  %v505_v8 = vadd.f32 %v1198_v42, %v504_v4 }
 0x120   :  { %v957_v9 = vpack.c.bf16 %v465_v7, %v463_v5  ;;  %v997_v10 = vpack.c.bf16 %v505_v8, %v503_v6 }
 0x122   :  { %1021 = vst [vmem:[%s1363_s3 + $0xb8] sm:$0xff] %v957_v9  }
 0x123   :  { %1029 = vst [vmem:[%s1363_s3 + $0xf8] sm:$0xff] %v997_v10  }

// kernel: conv_bn_net_forward.7
= control target key start
LH: loop header
LB: loop body
LE: loop exit
PB: predicated region body
PF: predicated region fallthrough
CT: control target
= control target key end

     0   :  { %s780_s1 = inlined_call_operand.vmem [shape: bf16[128,128], index: 1, kind: input, shape index: {}]   ;;  %s781_s0 = inlined_call_operand.vmem [shape: bf16[128,128], index: 0, kind: input, shape index: {}]   ;;  %s782_s2 = inlined_call_operand.vmem [shape: f32[1,128], index: 2, kind: input, shape index: {}]   ;;  %s783_s3 = inlined_call_operand.vmem [shape: f32[1,128], index: 3, kind: input, shape index: {}]   ;;  %s784_s4 = inlined_call_operand.vmem [shape: bf16[128,128], index: 4, kind: output, shape index: {}]  }
   0x1   :  { %v504_v0 = vld [vmem:[%s780_s1 + $0x38] sm:$0xff]  ;;  %v503_v1 = vld [vmem:[%s780_s1 + $0x30] sm:$0xff]  ;;  %v502_v2 = vld [vmem:[%s780_s1 + $0x28] sm:$0xff] }
   0x2   :  { %145 = vmatpush.bf16.msra.mxu0 %v504_v0  ;;  %552 = vmatpush.bf16.msra.mxu1 %v504_v0  ;;  %v501_v3 = vld [vmem:[%s780_s1 + $0x20] sm:$0xff]  ;;  %v500_v4 = vld [vmem:[%s780_s1 + $0x18] sm:$0xff]  ;;  %v499_v5 = vld [vmem:[%s780_s1 + $0x10] sm:$0xff] }
   0x3   :  { %553 = vmatpush.bf16.msra.mxu2 %v504_v0  ;;  %554 = vmatpush.bf16.msra.mxu3 %v504_v0  ;;  %v498_v6 = vld [vmem:[%s780_s1 + $0x8] sm:$0xff]  ;;  %v497_v7 = vld [vmem:[%s780_s1] sm:$0xff]  ;;  %v491_v9 = vld [vmem:[%s781_s0 + $0x10] sm:$0xff] }
   0x4   :  { %v489_v8 = vld [vmem:[%s781_s0] sm:$0xff]  ;;  %v495_v11 = vld [vmem:[%s781_s0 + $0x30] sm:$0xff]  ;;  %v490_v12 = vld [vmem:[%s781_s0 + $0x8] sm:$0xff] }
   0x5   :  { %v493_v10 = vld [vmem:[%s781_s0 + $0x20] sm:$0xff]  ;;  %v492_v13 = vld [vmem:[%s781_s0 + $0x18] sm:$0xff]  ;;  %v494_v14 = vld [vmem:[%s781_s0 + $0x28] sm:$0xff] }
   0x6   :  { %146 = vmatpush.bf16.msra.mxu0 %v503_v1  ;;  %555 = vmatpush.bf16.msra.mxu1 %v503_v1  ;;  %v496_v15 = vld [vmem:[%s781_s0 + $0x38] sm:$0xff] }
   0x7   :  { %556 = vmatpush.bf16.msra.mxu2 %v503_v1  ;;  %557 = vmatpush.bf16.msra.mxu3 %v503_v1 }
   0xa   :  { %147 = vmatpush.bf16.msra.mxu0 %v502_v2  ;;  %558 = vmatpush.bf16.msra.mxu1 %v502_v2 }
   0xb   :  { %559 = vmatpush.bf16.msra.mxu2 %v502_v2  ;;  %560 = vmatpush.bf16.msra.mxu3 %v502_v2 }
   0xe   :  { %148 = vmatpush.bf16.msra.mxu0 %v501_v3  ;;  %561 = vmatpush.bf16.msra.mxu1 %v501_v3 }
   0xf   :  { %562 = vmatpush.bf16.msra.mxu2 %v501_v3  ;;  %563 = vmatpush.bf16.msra.mxu3 %v501_v3 }
  0x12   :  { %149 = vmatpush.bf16.msra.mxu0 %v500_v4  ;;  %564 = vmatpush.bf16.msra.mxu1 %v500_v4 }
  0x13   :  { %565 = vmatpush.bf16.msra.mxu2 %v500_v4  ;;  %566 = vmatpush.bf16.msra.mxu3 %v500_v4 }
  0x16   :  { %150 = vmatpush.bf16.msra.mxu0 %v499_v5  ;;  %567 = vmatpush.bf16.msra.mxu1 %v499_v5 }
  0x17   :  { %568 = vmatpush.bf16.msra.mxu2 %v499_v5  ;;  %569 = vmatpush.bf16.msra.mxu3 %v499_v5 }
  0x1a   :  { %151 = vmatpush.bf16.msra.mxu0 %v498_v6  ;;  %570 = vmatpush.bf16.msra.mxu1 %v498_v6 }
  0x1b   :  { %571 = vmatpush.bf16.msra.mxu2 %v498_v6  ;;  %572 = vmatpush.bf16.msra.mxu3 %v498_v6 }
  0x1e   :  { %152 = vmatpush.bf16.msra.mxu0 %v497_v7  ;;  %573 = vmatpush.bf16.msra.mxu1 %v497_v7 }
  0x1f   :  { %574 = vmatpush.bf16.msra.mxu2 %v497_v7  ;;  %575 = vmatpush.bf16.msra.mxu3 %v497_v7 }
  0x21   :  { %153 = vmatmul.bf16.vlgmr.msra.gmra.mxu0 %v489_v8  ;;  %163 = vmatmul.bf16.vlgmr.msra.gmra.mxu1 %v491_v9 }
  0x22   :  { %173 = vmatmul.bf16.vlgmr.msra.gmra.mxu2 %v493_v10  ;;  %183 = vmatmul.bf16.vlgmr.msra.gmra.mxu3 %v495_v11 }
  0x31   :  { %158 = vmatmul.bf16.gmra.mxu0 %v490_v12  ;;  %168 = vmatmul.bf16.gmra.mxu1 %v492_v13 }
  0x32   :  { %178 = vmatmul.bf16.gmra.mxu2 %v494_v14  ;;  %188 = vmatmul.bf16.gmra.mxu3 %v496_v15 }
  0x9e   :  { %v154_v16 = vpop.f32.mrf.mxu0  ;;  %v164_v17 = vpop.f32.mrf.mxu1 }
  0x9f   :  { %v653_v26 = vmax.f32 %v154_v16, 0.0  ;;  %v662_v33 = vmax.f32 %v164_v17, 0.0 }
  0xa5   :  { %v174_v19 = vpop.f32.mrf.mxu2  ;;  %v184_v22 = vpop.f32.mrf.mxu3 }
  0xa6   :  { %v156_v18 = vpop.f32.mrf.mxu0  ;;  %v166_v20 = vpop.f32.mrf.mxu1  ;;  %v674_v43 = vmax.f32 %v174_v19, 0.0  ;;  %v686_v53 = vmax.f32 %v184_v22, 0.0 }
  0xa7   :  { %v651_v24 = vmax.f32 %v156_v18, 0.0  ;;  %v665_v36 = vmax.f32 %v166_v20, 0.0 }
  0xa9   :  { %v210_v28 = vadd.f32 %v651_v24, %v653_v26 }
  0xad   :  { %v176_v23 = vpop.f32.mrf.mxu2  ;;  %v186_v32 = vpop.f32.mrf.mxu3 }
  0xae   :  { %v159_v21 = vpop.f32.mrf.mxu0  ;;  %v169_v25 = vpop.f32.mrf.mxu1  ;;  %v677_v46 = vmax.f32 %v176_v23, 0.0  ;;  %v689_v55 = vmax.f32 %v186_v32, 0.0 }
  0xaf   :  { %v655_v27 = vmax.f32 %v159_v21, 0.0  ;;  %v668_v39 = vmax.f32 %v169_v25, 0.0 }
  0xb1   :  { %v211_v30 = vadd.f32 %v210_v28, %v655_v27 }
  0xb5   :  { %v179_v35 = vpop.f32.mrf.mxu2  ;;  %v189_v45 = vpop.f32.mrf.mxu3 }
  0xb6   :  { %v161_v29 = vpop.f32.mrf.mxu0  ;;  %v171_v38 = vpop.f32.mrf.mxu1  ;;  %v680_v49 = vmax.f32 %v179_v35, 0.0  ;;  %v692_v58 = vmax.f32 %v189_v45, 0.0 }
  0xb7   :  { %v660_v31 = vmax.f32 %v161_v29, 0.0  ;;  %v671_v41 = vmax.f32 %v171_v38, 0.0 }
  0xb9   :  { %v212_v34 = vadd.f32 %v211_v30, %v660_v31 }
  0xbb   :  { %v213_v37 = vadd.f32 %v212_v34, %v662_v33 }
  0xbd   :  { %v214_v40 = vadd.f32 %v213_v37, %v665_v36  ;;  %v181_v48 = vpop.f32.mrf.mxu2  ;;  %v191_v57 = vpop.f32.mrf.mxu3 }
  0xbe   :  { %v684_v52 = vmax.f32 %v181_v48, 0.0  ;;  %v696_v61 = vmax.f32 %v191_v57, 0.0 }
  0xbf   :  { %v215_v42 = vadd.f32 %v214_v40, %v668_v39 }
  0xc1   :  { %v216_v44 = vadd.f32 %v215_v42, %v671_v41 }
  0xc3   :  { %v217_v47 = vadd.f32 %v216_v44, %v674_v43 }
  0xc5   :  { %v218_v50 = vadd.f32 %v217_v47, %v677_v46 }
  0xc7   :  { %v219_v51 = vadd.f32 %v218_v50, %v680_v49 }
  0xc9   :  { %v220_v54 = vadd.f32 %v219_v51, %v684_v52 }
  0xcb   :  { %v221_v56 = vadd.f32 %v220_v54, %v686_v53 }
  0xcd   :  { %v222_v59 = vadd.f32 %v221_v56, %v689_v55 }
  0xcf   :  { %v223_v60 = vadd.f32 %v222_v59, %v692_v58 }
  0xd1   :  { %v224_v62 = vadd.f32 %v223_v60, %v696_v61 }
  0xd3   :  { %v225_v63 = vrot.slane %v224_v62, 4 }
  0xd5   :  { %v226_v0 = vadd.f32 %v225_v63, %v224_v62 }
  0xd7   :  { %v227_v1 = vrot.slane %v226_v0, 2 }
  0xd9   :  { %v228_v2 = vadd.f32 %v227_v1, %v226_v0 }
  0xdb   :  { %v229_v3 = vrot.slane %v228_v2, 1 }
  0xdd   :  { %v230_v4 = vadd.f32 %v229_v3, %v228_v2 }
  0xdf   :  { %v699_v5 = vmul.f32 0.0078125, %v230_v4 }
  0xe1   :  { %v265_v6 = vsub.f32 %v653_v26, %v699_v5  ;;  %v266_v7 = vsub.f32 %v651_v24, %v699_v5  ;;  %v267_v8 = vsub.f32 %v655_v27, %v699_v5  ;;  %v268_v11 = vsub.f32 %v660_v31, %v699_v5 }
  0xe2   :  { %v269_v12 = vsub.f32 %v662_v33, %v699_v5  ;;  %v270_v15 = vsub.f32 %v665_v36, %v699_v5  ;;  %v271_v18 = vsub.f32 %v668_v39, %v699_v5  ;;  %v272_v21 = vsub.f32 %v671_v41, %v699_v5 }
  0xe3   :  { %v297_v9 = vmul.f32 %v265_v6, %v265_v6  ;;  %v298_v10 = vmul.f32 %v266_v7, %v266_v7  ;;  %v299_v13 = vmul.f32 %v267_v8, %v267_v8  ;;  %v300_v16 = vmul.f32 %v268_v11, %v268_v11 }
  0xe4   :  { %v301_v19 = vmul.f32 %v269_v12, %v269_v12  ;;  %v302_v22 = vmul.f32 %v270_v15, %v270_v15  ;;  %v273_v25 = vsub.f32 %v674_v43, %v699_v5  ;;  %v303_v28 = vmul.f32 %v271_v18, %v271_v18 }
  0xe5   :  { %v313_v14 = vadd.f32 %v298_v10, %v297_v9  ;;  %v274_v30 = vsub.f32 %v677_v46, %v699_v5  ;;  %v304_v32 = vmul.f32 %v272_v21, %v272_v21  ;;  %v275_v35 = vsub.f32 %v680_v49, %v699_v5 }
  0xe6   :  { %v305_v37 = vmul.f32 %v273_v25, %v273_v25  ;;  %v276_v40 = vsub.f32 %v684_v52, %v699_v5  ;;  %v277_v45 = vsub.f32 %v686_v53, %v699_v5  ;;  %v278_v50 = vsub.f32 %v689_v55, %v699_v5 }
  0xe7   :  { %v314_v17 = vadd.f32 %v313_v14, %v299_v13  ;;  %v306_v42 = vmul.f32 %v274_v30, %v274_v30  ;;  %v307_v47 = vmul.f32 %v275_v35, %v275_v35  ;;  %v279_v56 = vsub.f32 %v692_v58, %v699_v5 }
  0xe8   :  { %v308_v51 = vmul.f32 %v276_v40, %v276_v40  ;;  %v309_v57 = vmul.f32 %v277_v45, %v277_v45  ;;  %v280_v60 = vsub.f32 %v696_v61, %v699_v5  ;;  %v310_v62 = vmul.f32 %v278_v50, %v278_v50 }
  0xe9   :  { %v315_v20 = vadd.f32 %v314_v17, %v300_v16  ;;  %v311_v0 = vmul.f32 %v279_v56, %v279_v56 }
  0xea   :  { %v312_v2 = vmul.f32 %v280_v60, %v280_v60 }
  0xeb   :  { %v316_v23 = vadd.f32 %v315_v20, %v301_v19  ;;  %v335_v19 = vld [vmem:[%s782_s2] sm:$0x1] }
  0xed   :  { %v317_v29 = vadd.f32 %v316_v23, %v302_v22  ;;  %v348_v23 = vld [vmem:[%s783_s3] sm:$0x1] }
  0xef   :  { %v318_v34 = vadd.f32 %v317_v29, %v303_v28 }
  0xf1   :  { %v319_v38 = vadd.f32 %v318_v34, %v304_v32 }
  0xf3   :  { %v320_v44 = vadd.f32 %v319_v38, %v305_v37 }
  0xf5   :  { %v321_v48 = vadd.f32 %v320_v44, %v306_v42 }
  0xf7   :  { %v322_v54 = vadd.f32 %v321_v48, %v307_v47 }
  0xf9   :  { %v323_v59 = vadd.f32 %v322_v54, %v308_v51 }
  0xfb   :  { %v324_v63 = vadd.f32 %v323_v59, %v309_v57 }
  0xfd   :  { %v325_v1 = vadd.f32 %v324_v63, %v310_v62 }
  0xff   :  { %v326_v3 = vadd.f32 %v325_v1, %v311_v0 }
 0x101   :  { %v327_v4 = vadd.f32 %v326_v3, %v312_v2 }
 0x103   :  { %v328_v6 = vrot.slane %v327_v4, 4 }
 0x105   :  { %v329_v7 = vadd.f32 %v328_v6, %v327_v4 }
 0x107   :  { %v330_v8 = vrot.slane %v329_v7, 2 }
 0x109   :  { %v331_v9 = vadd.f32 %v330_v8, %v329_v7 }
 0x10b   :  { %v332_v10 = vrot.slane %v331_v9, 1 }
 0x10d   :  { %v333_v11 = vadd.f32 %v332_v10, %v331_v9 }
 0x10f   :  { %v334_v12 = vmul.f32 0.0078125, %v333_v11 }
 0x111   :  { %v336_v13 = vadd.f32 1e-05, %v334_v12 }
 0x113   :  { %576 = vrsqrt.f32 %v336_v13  ;;  %vm343_vm1 = vweird.f32 %v336_v13 }
 0x119   :  { %v577_v14 = vpop.eup %576 }
 0x11a   :  { %v338_v15 = vmul.f32 %v577_v14, %v336_v13  ;;  %vm344_vm0 = vweird.f32 %v577_v14 }
 0x11b   :  { %vm345_vm2 = vmor %vm343_vm1, %vm344_vm0 }
 0x11c   :  { %v339_v16 = vmul.f32 %v577_v14, %v338_v15 }
 0x11e   :  { %v340_v17 = vmul.f32 0.5, %v339_v16 }
 0x120   :  { %v341_v18 = vsub.f32 1.5, %v340_v17 }
 0x122   :  { %v342_v20 = vmul.f32 %v577_v14, %v341_v18 }
 0x124   :  { %v346_v21 = vsel %vm345_vm2, %v577_v14, %v342_v20 }
 0x125   :  { %v347_v22 = vmul.f32 %v346_v21, %v335_v19 }
 0x127   :  { %v349_v25 = vmul.f32 %v347_v22, %v699_v5  ;;  %v352_v28 = vperm.slane %v347_v22, 0 }
 0x129   :  { %v350_v29 = vsub.f32 %v348_v23, %v349_v25  ;;  %v354_v30 = vmul.f32 %v352_v28, %v653_v26  ;;  %v355_v32 = vmul.f32 %v352_v28, %v651_v24  ;;  %v356_v34 = vmul.f32 %v352_v28, %v655_v27 }
 0x12a   :  { %v357_v35 = vmul.f32 %v352_v28, %v660_v31  ;;  %v358_v37 = vmul.f32 %v352_v28, %v662_v33  ;;  %v359_v38 = vmul.f32 %v352_v28, %v665_v36  ;;  %v360_v40 = vmul.f32 %v352_v28, %v668_v39 }
 0x12b   :  { %v361_v42 = vmul.f32 %v352_v28, %v671_v41  ;;  %v362_v5 = vmul.f32 %v352_v28, %v674_v43  ;;  %v371_v44 = vperm.slane %v350_v29, 0  ;;  %v363_v45 = vmul.f32 %v352_v28, %v677_v46 }
 0x12c   :  { %v364_v26 = vmul.f32 %v352_v28, %v680_v49  ;;  %v365_v24 = vmul.f32 %v352_v28, %v684_v52  ;;  %v366_v27 = vmul.f32 %v352_v28, %v686_v53  ;;  %v367_v41 = vmul.f32 %v352_v28, %v689_v55 }
 0x12d   :  { %v373_v31 = vadd.f32 %v371_v44, %v354_v30  ;;  %v374_v47 = vadd.f32 %v371_v44, %v355_v32  ;;  %v375_v33 = vadd.f32 %v371_v44, %v356_v34  ;;  %v376_v48 = vadd.f32 %v371_v44, %v357_v35 }
 0x12e   :  { %v377_v36 = vadd.f32 %v371_v44, %v358_v37  ;;  %v378_v50 = vadd.f32 %v371_v44, %v359_v38  ;;  %v379_v39 = vadd.f32 %v371_v44, %v360_v40  ;;  %v380_v51 = vadd.f32 %v371_v44, %v361_v42 }
 0x12f   :  { %v368_v43 = vmul.f32 %v352_v28, %v692_v58  ;;  %v381_v54 = vadd.f32 %v371_v44, %v362_v5  ;;  %v382_v46 = vadd.f32 %v371_v44, %v363_v45  ;;  %v369_v49 = vmul.f32 %v352_v28, %v696_v61 }
 0x130   :  { %v383_v56 = vadd.f32 %v371_v44, %v364_v26  ;;  %v384_v52 = vadd.f32 %v371_v44, %v365_v24  ;;  %v385_v57 = vadd.f32 %v371_v44, %v366_v27  ;;  %v386_v53 = vadd.f32 %v371_v44, %v367_v41 }
 0x131   :  { %v508_v59 = vpack.c.bf16 %v374_v47, %v373_v31  ;;  %v513_v60 = vpack.c.bf16 %v376_v48, %v375_v33  ;;  %v518_v62 = vpack.c.bf16 %v378_v50, %v377_v36  ;;  %v387_v63 = vadd.f32 %v371_v44, %v368_v43 }
 0x132   :  { %v388_v0 = vadd.f32 %v371_v44, %v369_v49  ;;  %v523_v1 = vpack.c.bf16 %v380_v51, %v379_v39  ;;  %v528_v55 = vpack.c.bf16 %v382_v46, %v381_v54  ;;  %v533_v58 = vpack.c.bf16 %v384_v52, %v383_v56 }
 0x133   :  { %509 = vst [vmem:[%s784_s4] sm:$0xff] %v508_v59   ;;  %v538_v61 = vpack.c.bf16 %v386_v53, %v385_v57 }
 0x134   :  { %545 = vst [vmem:[%s784_s4 + $0x8] sm:$0xff] %v513_v60   ;;  %v543_v2 = vpack.c.bf16 %v388_v0, %v387_v63 }
 0x135   :  { %546 = vst [vmem:[%s784_s4 + $0x10] sm:$0xff] %v518_v62  }
 0x136   :  { %547 = vst [vmem:[%s784_s4 + $0x18] sm:$0xff] %v523_v1  }
 0x137   :  { %548 = vst [vmem:[%s784_s4 + $0x20] sm:$0xff] %v528_v55  }
 0x138   :  { %549 = vst [vmem:[%s784_s4 + $0x28] sm:$0xff] %v533_v58  }
 0x139   :  { %550 = vst [vmem:[%s784_s4 + $0x30] sm:$0xff] %v538_v61  }
 0x13a   :  { %551 = vst [vmem:[%s784_s4 + $0x38] sm:$0xff] %v543_v2  }

// kernel: conv_bn_net_forward.8
= control target key start
LH: loop header
LB: loop body
LE: loop exit
PB: predicated region body
PF: predicated region fallthrough
CT: control target
= control target key end

     0   :  { %s1093_s1 = inlined_call_operand.vmem [shape: bf16[256,128], index: 1, kind: input, shape index: {}]   ;;  %s1094_s0 = inlined_call_operand.vmem [shape: bf16[128,256], index: 0, kind: input, shape index: {}]   ;;  %s1095_s2 = inlined_call_operand.vmem [shape: f32[1,128], index: 2, kind: input, shape index: {}]   ;;  %s1096_s3 = inlined_call_operand.vmem [shape: f32[1,128], index: 3, kind: input, shape index: {}]   ;;  %s1097_s4 = inlined_call_operand.vmem [shape: bf16[128,128], index: 4, kind: output, shape index: {}]  }
   0x1   :  { %v721_v0 = vld [vmem:[%s1093_s1 + $0x38] sm:$0xff]  ;;  %v720_v2 = vld [vmem:[%s1093_s1 + $0x30] sm:$0xff]  ;;  %v719_v4 = vld [vmem:[%s1093_s1 + $0x28] sm:$0xff] }
   0x2   :  { %v729_v1 = vld [vmem:[%s1093_s1 + $0x78] sm:$0xff]  ;;  %241 = vmatpush.bf16.msra.mxu0 %v721_v0  ;;  %v728_v3 = vld [vmem:[%s1093_s1 + $0x70] sm:$0xff]  ;;  %777 = vmatpush.bf16.msra.mxu2 %v721_v0  ;;  %v727_v5 = vld [vmem:[%s1093_s1 + $0x68] sm:$0xff] }
   0x3   :  { %290 = vmatpush.bf16.msra.mxu1 %v729_v1  ;;  %785 = vmatpush.bf16.msra.mxu3 %v729_v1  ;;  %v718_v6 = vld [vmem:[%s1093_s1 + $0x20] sm:$0xff]  ;;  %v717_v8 = vld [vmem:[%s1093_s1 + $0x18] sm:$0xff]  ;;  %v716_v10 = vld [vmem:[%s1093_s1 + $0x10] sm:$0xff] }
   0x4   :  { %v726_v7 = vld [vmem:[%s1093_s1 + $0x60] sm:$0xff]  ;;  %v725_v9 = vld [vmem:[%s1093_s1 + $0x58] sm:$0xff]  ;;  %v724_v11 = vld [vmem:[%s1093_s1 + $0x50] sm:$0xff] }
   0x5   :  { %v715_v12 = vld [vmem:[%s1093_s1 + $0x8] sm:$0xff]  ;;  %v714_v14 = vld [vmem:[%s1093_s1] sm:$0xff]  ;;  %v580_v28 = vld [vmem:[%s1094_s0 + $0x10] sm:$0xf] }
   0x6   :  { %242 = vmatpush.bf16.msra.mxu0 %v720_v2  ;;  %778 = vmatpush.bf16.msra.mxu2 %v720_v2  ;;  %v723_v13 = vld [vmem:[%s1093_s1 + $0x48] sm:$0xff]  ;;  %v722_v15 = vld [vmem:[%s1093_s1 + $0x40] sm:$0xff]  ;;  %v701_v29 = vld [vmem:[%s1094_s0 + $0x14] sm:$0xf0] }
   0x7   :  { %291 = vmatpush.bf16.msra.mxu1 %v728_v3  ;;  %786 = vmatpush.bf16.msra.mxu3 %v728_v3  ;;  %v572_v16 = vld [vmem:[%s1094_s0] sm:$0xf]  ;;  %v699_v17 = vld [vmem:[%s1094_s0 + $0x4] sm:$0xf0]  ;;  %v698_v18 = vld [vmem:[%s1094_s0 + $0x4] sm:$0xf]  ;;  %v581_v36 = vor.u32 %v701_v29, %v580_v28 }
   0x8   :  { %v574_v19 = vld [vmem:[%s1094_s0 + $0x8] sm:$0xf0]  ;;  %v604_v20 = vld [vmem:[%s1094_s0 + $0x40] sm:$0xf]  ;;  %v707_v21 = vld [vmem:[%s1094_s0 + $0x44] sm:$0xf0]  ;;  %v573_v24 = vor.u32 %v699_v17, %v572_v16 }
   0x9   :  { %v706_v22 = vld [vmem:[%s1094_s0 + $0x44] sm:$0xf]  ;;  %v606_v23 = vld [vmem:[%s1094_s0 + $0x48] sm:$0xf0]  ;;  %v577_v25 = vor.u32 %v698_v18, %v574_v19  ;;  %v605_v26 = vor.u32 %v707_v21, %v604_v20  ;;  %v700_v30 = vld [vmem:[%s1094_s0 + $0x14] sm:$0xf] }
   0xa   :  { %243 = vmatpush.bf16.msra.mxu0 %v719_v4  ;;  %779 = vmatpush.bf16.msra.mxu2 %v719_v4  ;;  %v609_v27 = vor.u32 %v706_v22, %v606_v23  ;;  %v582_v31 = vld [vmem:[%s1094_s0 + $0x18] sm:$0xf0]  ;;  %v612_v32 = vld [vmem:[%s1094_s0 + $0x50] sm:$0xf]  ;;  %v709_v33 = vld [vmem:[%s1094_s0 + $0x54] sm:$0xf0] }
   0xb   :  { %292 = vmatpush.bf16.msra.mxu1 %v727_v5  ;;  %787 = vmatpush.bf16.msra.mxu3 %v727_v5  ;;  %v708_v34 = vld [vmem:[%s1094_s0 + $0x54] sm:$0xf]  ;;  %v614_v35 = vld [vmem:[%s1094_s0 + $0x58] sm:$0xf0]  ;;  %v585_v37 = vor.u32 %v700_v30, %v582_v31  ;;  %v613_v38 = vor.u32 %v709_v33, %v612_v32  ;;  %v588_v40 = vld [vmem:[%s1094_s0 + $0x20] sm:$0xf] }
   0xc   :  { %v617_v39 = vor.u32 %v708_v34, %v614_v35  ;;  %v703_v41 = vld [vmem:[%s1094_s0 + $0x24] sm:$0xf0]  ;;  %v702_v42 = vld [vmem:[%s1094_s0 + $0x24] sm:$0xf]  ;;  %v590_v43 = vld [vmem:[%s1094_s0 + $0x28] sm:$0xf0] }
   0xd   :  { %v620_v44 = vld [vmem:[%s1094_s0 + $0x60] sm:$0xf]  ;;  %v711_v45 = vld [vmem:[%s1094_s0 + $0x64] sm:$0xf0]  ;;  %v710_v46 = vld [vmem:[%s1094_s0 + $0x64] sm:$0xf]  ;;  %v589_v48 = vor.u32 %v703_v41, %v588_v40  ;;  %v593_v49 = vor.u32 %v702_v42, %v590_v43 }
   0xe   :  { %244 = vmatpush.bf16.msra.mxu0 %v718_v6  ;;  %780 = vmatpush.bf16.msra.mxu2 %v718_v6  ;;  %v622_v47 = vld [vmem:[%s1094_s0 + $0x68] sm:$0xf0]  ;;  %v621_v50 = vor.u32 %v711_v45, %v620_v44  ;;  %v596_v52 = vld [vmem:[%s1094_s0 + $0x30] sm:$0xf]  ;;  %v705_v53 = vld [vmem:[%s1094_s0 + $0x34] sm:$0xf0] }
   0xf   :  { %293 = vmatpush.bf16.msra.mxu1 %v726_v7  ;;  %788 = vmatpush.bf16.msra.mxu3 %v726_v7  ;;  %v625_v51 = vor.u32 %v710_v46, %v622_v47  ;;  %v704_v54 = vld [vmem:[%s1094_s0 + $0x34] sm:$0xf]  ;;  %v598_v55 = vld [vmem:[%s1094_s0 + $0x38] sm:$0xf0]  ;;  %v628_v56 = vld [vmem:[%s1094_s0 + $0x70] sm:$0xf]  ;;  %v597_v60 = vor.u32 %v705_v53, %v596_v52 }
  0x10   :  { %v713_v57 = vld [vmem:[%s1094_s0 + $0x74] sm:$0xf0]  ;;  %v712_v58 = vld [vmem:[%s1094_s0 + $0x74] sm:$0xf]  ;;  %v630_v59 = vld [vmem:[%s1094_s0 + $0x78] sm:$0xf0]  ;;  %v601_v61 = vor.u32 %v704_v54, %v598_v55 }
  0x11   :  { %v629_v62 = vor.u32 %v713_v57, %v628_v56  ;;  %v633_v63 = vor.u32 %v712_v58, %v630_v59 }
  0x12   :  { %245 = vmatpush.bf16.msra.mxu0 %v717_v8  ;;  %781 = vmatpush.bf16.msra.mxu2 %v717_v8 }
  0x13   :  { %294 = vmatpush.bf16.msra.mxu1 %v725_v9  ;;  %789 = vmatpush.bf16.msra.mxu3 %v725_v9 }
  0x16   :  { %246 = vmatpush.bf16.msra.mxu0 %v716_v10  ;;  %782 = vmatpush.bf16.msra.mxu2 %v716_v10 }
  0x17   :  { %295 = vmatpush.bf16.msra.mxu1 %v724_v11  ;;  %790 = vmatpush.bf16.msra.mxu3 %v724_v11 }
  0x1a   :  { %247 = vmatpush.bf16.msra.mxu0 %v715_v12  ;;  %783 = vmatpush.bf16.msra.mxu2 %v715_v12 }
  0x1b   :  { %296 = vmatpush.bf16.msra.mxu1 %v723_v13  ;;  %791 = vmatpush.bf16.msra.mxu3 %v723_v13 }
  0x1e   :  { %248 = vmatpush.bf16.msra.mxu0 %v714_v14  ;;  %784 = vmatpush.bf16.msra.mxu2 %v714_v14 }
  0x1f   :  { %297 = vmatpush.bf16.msra.mxu1 %v722_v15  ;;  %792 = vmatpush.bf16.msra.mxu3 %v722_v15 }
  0x21   :  { %249 = vmatmul.bf16.vlgmr.msra.gmra.mxu0 %v573_v24  ;;  %269 = vmatmul.bf16.vlgmr.msra.gmra.mxu2 %v605_v26 }
  0x22   :  { %298 = vmatmul.bf16.vlgmr.msra.gmra.mxu1 %v577_v25  ;;  %318 = vmatmul.bf16.vlgmr.msra.gmra.mxu3 %v609_v27 }
  0x31   :  { %254 = vmatmul.bf16.gmra.mxu0 %v581_v36  ;;  %274 = vmatmul.bf16.gmra.mxu2 %v613_v38 }
  0x32   :  { %303 = vmatmul.bf16.gmra.mxu1 %v585_v37  ;;  %323 = vmatmul.bf16.gmra.mxu3 %v617_v39 }
  0x41   :  { %259 = vmatmul.bf16.gmra.mxu0 %v589_v48  ;;  %279 = vmatmul.bf16.gmra.mxu2 %v621_v50 }
  0x42   :  { %308 = vmatmul.bf16.gmra.mxu1 %v593_v49  ;;  %328 = vmatmul.bf16.gmra.mxu3 %v625_v51 }
  0x51   :  { %264 = vmatmul.bf16.gmra.mxu0 %v597_v60  ;;  %284 = vmatmul.bf16.gmra.mxu2 %v629_v62 }
  0x52   :  { %313 = vmatmul.bf16.gmra.mxu1 %v601_v61  ;;  %333 = vmatmul.bf16.gmra.mxu3 %v633_v63 }
  0x9e   :  { %v250_v0 = vpop.f32.mrf.mxu0 }
  0x9f   :  { %v299_v1 = vpop.f32.mrf.mxu1 }
  0xa0   :  { %v300_v23 = vadd.f32 %v299_v1, %v250_v0 }
  0xa2   :  { %v966_v27 = vmax.f32 %v300_v23, 0.0 }
  0xa4   :  { %v270_v2 = vpop.f32.mrf.mxu2 }
  0xa5   :  { %v319_v3 = vpop.f32.mrf.mxu3 }
  0xa6   :  { %v252_v4 = vpop.f32.mrf.mxu0  ;;  %v320_v46 = vadd.f32 %v319_v3, %v270_v2 }
  0xa7   :  { %v301_v5 = vpop.f32.mrf.mxu1 }
  0xa8   :  { %v302_v22 = vadd.f32 %v301_v5, %v252_v4  ;;  %v987_v54 = vmax.f32 %v320_v46, 0.0 }
  0xaa   :  { %v964_v25 = vmax.f32 %v302_v22, 0.0 }
  0xac   :  { %v272_v6 = vpop.f32.mrf.mxu2  ;;  %v355_v34 = vadd.f32 %v964_v25, %v966_v27 }
  0xad   :  { %v321_v7 = vpop.f32.mrf.mxu3 }
  0xae   :  { %v255_v8 = vpop.f32.mrf.mxu0  ;;  %v322_v51 = vadd.f32 %v321_v7, %v272_v6 }
  0xaf   :  { %v304_v9 = vpop.f32.mrf.mxu1 }
  0xb0   :  { %v305_v24 = vadd.f32 %v304_v9, %v255_v8  ;;  %v990_v57 = vmax.f32 %v322_v51, 0.0 }
  0xb2   :  { %v968_v28 = vmax.f32 %v305_v24, 0.0 }
  0xb4   :  { %v275_v10 = vpop.f32.mrf.mxu2  ;;  %v356_v37 = vadd.f32 %v355_v34, %v968_v28 }
  0xb5   :  { %v324_v11 = vpop.f32.mrf.mxu3 }
  0xb6   :  { %v257_v12 = vpop.f32.mrf.mxu0  ;;  %v325_v55 = vadd.f32 %v324_v11, %v275_v10 }
  0xb7   :  { %v306_v13 = vpop.f32.mrf.mxu1 }
  0xb8   :  { %v307_v26 = vadd.f32 %v306_v13, %v257_v12  ;;  %v993_v60 = vmax.f32 %v325_v55, 0.0 }
  0xba   :  { %v972_v35 = vmax.f32 %v307_v26, 0.0 }
  0xbc   :  { %v277_v14 = vpop.f32.mrf.mxu2  ;;  %v357_v40 = vadd.f32 %v356_v37, %v972_v35 }
  0xbd   :  { %v326_v15 = vpop.f32.mrf.mxu3 }
  0xbe   :  { %v260_v16 = vpop.f32.mrf.mxu0  ;;  %v327_v58 = vadd.f32 %v326_v15, %v277_v14 }
  0xbf   :  { %v309_v17 = vpop.f32.mrf.mxu1 }
  0xc0   :  { %v310_v29 = vadd.f32 %v309_v17, %v260_v16  ;;  %v996_v63 = vmax.f32 %v327_v58, 0.0 }
  0xc2   :  { %v975_v38 = vmax.f32 %v310_v29, 0.0 }
  0xc4   :  { %v280_v18 = vpop.f32.mrf.mxu2  ;;  %v358_v42 = vadd.f32 %v357_v40, %v975_v38 }
  0xc5   :  { %v329_v19 = vpop.f32.mrf.mxu3 }
  0xc6   :  { %v262_v20 = vpop.f32.mrf.mxu0  ;;  %v330_v61 = vadd.f32 %v329_v19, %v280_v18 }
  0xc7   :  { %v311_v21 = vpop.f32.mrf.mxu1 }
  0xc8   :  { %v312_v36 = vadd.f32 %v311_v21, %v262_v20  ;;  %v999_v4 = vmax.f32 %v330_v61, 0.0 }
  0xca   :  { %v978_v41 = vmax.f32 %v312_v36, 0.0 }
  0xcc   :  { %v282_v30 = vpop.f32.mrf.mxu2  ;;  %v359_v47 = vadd.f32 %v358_v42, %v978_v41 }
  0xcd   :  { %v331_v31 = vpop.f32.mrf.mxu3 }
  0xce   :  { %v265_v32 = vpop.f32.mrf.mxu0  ;;  %v332_v0 = vadd.f32 %v331_v31, %v282_v30 }
  0xcf   :  { %v314_v33 = vpop.f32.mrf.mxu1 }
  0xd0   :  { %v315_v39 = vadd.f32 %v314_v33, %v265_v32  ;;  %v1002_v7 = vmax.f32 %v332_v0, 0.0 }
  0xd2   :  { %v981_v43 = vmax.f32 %v315_v39, 0.0 }
  0xd4   :  { %v285_v49 = vpop.f32.mrf.mxu2  ;;  %v360_v52 = vadd.f32 %v359_v47, %v981_v43 }
  0xd5   :  { %v334_v50 = vpop.f32.mrf.mxu3 }
  0xd6   :  { %v267_v44 = vpop.f32.mrf.mxu0  ;;  %v335_v5 = vadd.f32 %v334_v50, %v285_v49 }
  0xd7   :  { %v316_v45 = vpop.f32.mrf.mxu1 }
  0xd8   :  { %v317_v48 = vadd.f32 %v316_v45, %v267_v44  ;;  %v1005_v10 = vmax.f32 %v335_v5, 0.0 }
  0xda   :  { %v985_v53 = vmax.f32 %v317_v48, 0.0 }
  0xdc   :  { %v361_v56 = vadd.f32 %v360_v52, %v985_v53  ;;  %v287_v2 = vpop.f32.mrf.mxu2 }
  0xdd   :  { %v336_v3 = vpop.f32.mrf.mxu3 }
  0xde   :  { %v362_v59 = vadd.f32 %v361_v56, %v987_v54  ;;  %v337_v9 = vadd.f32 %v336_v3, %v287_v2 }
  0xe0   :  { %v363_v62 = vadd.f32 %v362_v59, %v990_v57  ;;  %v1009_v13 = vmax.f32 %v337_v9, 0.0 }
  0xe2   :  { %v364_v1 = vadd.f32 %v363_v62, %v993_v60 }
  0xe4   :  { %v365_v6 = vadd.f32 %v364_v1, %v996_v63 }
  0xe6   :  { %v366_v8 = vadd.f32 %v365_v6, %v999_v4 }
  0xe8   :  { %v367_v11 = vadd.f32 %v366_v8, %v1002_v7 }
  0xea   :  { %v368_v12 = vadd.f32 %v367_v11, %v1005_v10 }
  0xec   :  { %v369_v14 = vadd.f32 %v368_v12, %v1009_v13 }
  0xee   :  { %v370_v15 = vrot.slane %v369_v14, 4 }
  0xf0   :  { %v371_v16 = vadd.f32 %v370_v15, %v369_v14 }
  0xf2   :  { %v372_v17 = vrot.slane %v371_v16, 2 }
  0xf4   :  { %v373_v18 = vadd.f32 %v372_v17, %v371_v16 }
  0xf6   :  { %v374_v19 = vrot.slane %v373_v18, 1 }
  0xf8   :  { %v375_v20 = vadd.f32 %v374_v19, %v373_v18 }
  0xfa   :  { %v1012_v21 = vmul.f32 0.0078125, %v375_v20 }
  0xfc   :  { %v410_v22 = vsub.f32 %v966_v27, %v1012_v21  ;;  %v411_v23 = vsub.f32 %v964_v25, %v1012_v21  ;;  %v412_v24 = vsub.f32 %v968_v28, %v1012_v21  ;;  %v413_v30 = vsub.f32 %v972_v35, %v1012_v21 }
  0xfd   :  { %v414_v31 = vsub.f32 %v975_v38, %v1012_v21  ;;  %v415_v34 = vsub.f32 %v978_v41, %v1012_v21  ;;  %v416_v39 = vsub.f32 %v981_v43, %v1012_v21  ;;  %v417_v44 = vsub.f32 %v985_v53, %v1012_v21 }
  0xfe   :  { %v442_v26 = vmul.f32 %v410_v22, %v410_v22  ;;  %v443_v29 = vmul.f32 %v411_v23, %v411_v23  ;;  %v444_v32 = vmul.f32 %v412_v24, %v412_v24  ;;  %v445_v36 = vmul.f32 %v413_v30, %v413_v30 }
  0xff   :  { %v446_v40 = vmul.f32 %v414_v31, %v414_v31  ;;  %v447_v45 = vmul.f32 %v415_v34, %v415_v34  ;;  %v418_v47 = vsub.f32 %v987_v54, %v1012_v21  ;;  %v448_v48 = vmul.f32 %v416_v39, %v416_v39 }
 0x100   :  { %v458_v33 = vadd.f32 %v443_v29, %v442_v26  ;;  %v419_v50 = vsub.f32 %v990_v57, %v1012_v21  ;;  %v449_v51 = vmul.f32 %v417_v44, %v417_v44  ;;  %v420_v55 = vsub.f32 %v993_v60, %v1012_v21 }
 0x101   :  { %v450_v56 = vmul.f32 %v418_v47, %v418_v47  ;;  %v421_v59 = vsub.f32 %v996_v63, %v1012_v21  ;;  %v422_v0 = vsub.f32 %v999_v4, %v1012_v21  ;;  %v423_v3 = vsub.f32 %v1002_v7, %v1012_v21 }
 0x102   :  { %v459_v37 = vadd.f32 %v458_v33, %v444_v32  ;;  %v451_v61 = vmul.f32 %v419_v50, %v419_v50  ;;  %v452_v1 = vmul.f32 %v420_v55, %v420_v55  ;;  %v424_v8 = vsub.f32 %v1005_v10, %v1012_v21 }
 0x103   :  { %v453_v5 = vmul.f32 %v421_v59, %v421_v59  ;;  %v454_v9 = vmul.f32 %v422_v0, %v422_v0  ;;  %v425_v12 = vsub.f32 %v1009_v13, %v1012_v21  ;;  %v455_v14 = vmul.f32 %v423_v3, %v423_v3 }
 0x104   :  { %v460_v42 = vadd.f32 %v459_v37, %v445_v36  ;;  %v456_v16 = vmul.f32 %v424_v8, %v424_v8 }
 0x105   :  { %v457_v18 = vmul.f32 %v425_v12, %v425_v12 }
 0x106   :  { %v461_v46 = vadd.f32 %v460_v42, %v446_v40  ;;  %v480_v40 = vld [vmem:[%s1095_s2] sm:$0x1] }
 0x108   :  { %v462_v49 = vadd.f32 %v461_v46, %v447_v45  ;;  %v493_v46 = vld [vmem:[%s1096_s3] sm:$0x1] }
 0x10a   :  { %v463_v52 = vadd.f32 %v462_v49, %v448_v48 }
 0x10c   :  { %v464_v58 = vadd.f32 %v463_v52, %v449_v51 }
 0x10e   :  { %v465_v62 = vadd.f32 %v464_v58, %v450_v56 }
 0x110   :  { %v466_v2 = vadd.f32 %v465_v62, %v451_v61 }
 0x112   :  { %v467_v6 = vadd.f32 %v466_v2, %v452_v1 }
 0x114   :  { %v468_v11 = vadd.f32 %v467_v6, %v453_v5 }
 0x116   :  { %v469_v15 = vadd.f32 %v468_v11, %v454_v9 }
 0x118   :  { %v470_v17 = vadd.f32 %v469_v15, %v455_v14 }
 0x11a   :  { %v471_v19 = vadd.f32 %v470_v17, %v456_v16 }
 0x11c   :  { %v472_v20 = vadd.f32 %v471_v19, %v457_v18 }
 0x11e   :  { %v473_v22 = vrot.slane %v472_v20, 4 }
 0x120   :  { %v474_v23 = vadd.f32 %v473_v22, %v472_v20 }
 0x122   :  { %v475_v24 = vrot.slane %v474_v23, 2 }
 0x124   :  { %v476_v26 = vadd.f32 %v475_v24, %v474_v23 }
 0x126   :  { %v477_v29 = vrot.slane %v476_v26, 1 }
 0x128   :  { %v478_v30 = vadd.f32 %v477_v29, %v476_v26 }
 0x12a   :  { %v479_v31 = vmul.f32 0.0078125, %v478_v30 }
 0x12c   :  { %v481_v32 = vadd.f32 1e-05, %v479_v31 }
 0x12e   :  { %793 = vrsqrt.f32 %v481_v32  ;;  %vm488_vm1 = vweird.f32 %v481_v32 }
 0x134   :  { %v794_v33 = vpop.eup %793 }
 0x135   :  { %v483_v34 = vmul.f32 %v794_v33, %v481_v32  ;;  %vm489_vm0 = vweird.f32 %v794_v33 }
 0x136   :  { %vm490_vm2 = vmor %vm488_vm1, %vm489_vm0 }
 0x137   :  { %v484_v36 = vmul.f32 %v794_v33, %v483_v34 }
 0x139   :  { %v485_v37 = vmul.f32 0.5, %v484_v36 }
 0x13b   :  { %v486_v39 = vsub.f32 1.5, %v485_v37 }
 0x13d   :  { %v487_v42 = vmul.f32 %v794_v33, %v486_v39 }
 0x13f   :  { %v491_v44 = vsel %vm490_vm2, %v794_v33, %v487_v42 }
 0x140   :  { %v492_v45 = vmul.f32 %v491_v44, %v480_v40 }
 0x142   :  { %v494_v47 = vmul.f32 %v492_v45, %v1012_v21  ;;  %v497_v48 = vperm.slane %v492_v45, 0 }
 0x144   :  { %v495_v49 = vsub.f32 %v493_v46, %v494_v47  ;;  %v499_v50 = vmul.f32 %v497_v48, %v966_v27  ;;  %v500_v51 = vmul.f32 %v497_v48, %v964_v25  ;;  %v501_v52 = vmul.f32 %v497_v48, %v968_v28 }
 0x145   :  { %v502_v55 = vmul.f32 %v497_v48, %v972_v35  ;;  %v503_v56 = vmul.f32 %v497_v48, %v975_v38  ;;  %v504_v58 = vmul.f32 %v497_v48, %v978_v41  ;;  %v505_v59 = vmul.f32 %v497_v48, %v981_v43 }
 0x146   :  { %v506_v61 = vmul.f32 %v497_v48, %v985_v53  ;;  %v507_v21 = vmul.f32 %v497_v48, %v987_v54  ;;  %v516_v62 = vperm.slane %v495_v49, 0  ;;  %v508_v0 = vmul.f32 %v497_v48, %v990_v57 }
 0x147   :  { %v509_v27 = vmul.f32 %v497_v48, %v993_v60  ;;  %v510_v25 = vmul.f32 %v497_v48, %v996_v63  ;;  %v511_v28 = vmul.f32 %v497_v48, %v999_v4  ;;  %v512_v53 = vmul.f32 %v497_v48, %v1002_v7 }
 0x148   :  { %v518_v35 = vadd.f32 %v516_v62, %v499_v50  ;;  %v519_v1 = vadd.f32 %v516_v62, %v500_v51  ;;  %v520_v38 = vadd.f32 %v516_v62, %v501_v52  ;;  %v521_v2 = vadd.f32 %v516_v62, %v502_v55 }
 0x149   :  { %v522_v41 = vadd.f32 %v516_v62, %v503_v56  ;;  %v523_v3 = vadd.f32 %v516_v62, %v504_v58  ;;  %v524_v43 = vadd.f32 %v516_v62, %v505_v59  ;;  %v525_v5 = vadd.f32 %v516_v62, %v506_v61 }
 0x14a   :  { %v513_v54 = vmul.f32 %v497_v48, %v1005_v10  ;;  %v526_v6 = vadd.f32 %v516_v62, %v507_v21  ;;  %v527_v57 = vadd.f32 %v516_v62, %v508_v0  ;;  %v514_v60 = vmul.f32 %v497_v48, %v1009_v13 }
 0x14b   :  { %v528_v8 = vadd.f32 %v516_v62, %v509_v27  ;;  %v529_v63 = vadd.f32 %v516_v62, %v510_v25  ;;  %v530_v9 = vadd.f32 %v516_v62, %v511_v28  ;;  %v531_v4 = vadd.f32 %v516_v62, %v512_v53 }
 0x14c   :  { %v733_v11 = vpack.c.bf16 %v519_v1, %v518_v35  ;;  %v738_v12 = vpack.c.bf16 %v521_v2, %v520_v38  ;;  %v743_v14 = vpack.c.bf16 %v523_v3, %v522_v41  ;;  %v532_v15 = vadd.f32 %v516_v62, %v513_v54 }
 0x14d   :  { %v533_v16 = vadd.f32 %v516_v62, %v514_v60  ;;  %v748_v17 = vpack.c.bf16 %v525_v5, %v524_v43  ;;  %v753_v7 = vpack.c.bf16 %v527_v57, %v526_v6  ;;  %v758_v10 = vpack.c.bf16 %v529_v63, %v528_v8 }
 0x14e   :  { %734 = vst [vmem:[%s1097_s4] sm:$0xff] %v733_v11   ;;  %v763_v13 = vpack.c.bf16 %v531_v4, %v530_v9 }
 0x14f   :  { %770 = vst [vmem:[%s1097_s4 + $0x8] sm:$0xff] %v738_v12   ;;  %v768_v18 = vpack.c.bf16 %v533_v16, %v532_v15 }
 0x150   :  { %771 = vst [vmem:[%s1097_s4 + $0x10] sm:$0xff] %v743_v14  }
 0x151   :  { %772 = vst [vmem:[%s1097_s4 + $0x18] sm:$0xff] %v748_v17  }
 0x152   :  { %773 = vst [vmem:[%s1097_s4 + $0x20] sm:$0xff] %v753_v7  }
 0x153   :  { %774 = vst [vmem:[%s1097_s4 + $0x28] sm:$0xff] %v758_v10  }
 0x154   :  { %775 = vst [vmem:[%s1097_s4 + $0x30] sm:$0xff] %v763_v13  }
 0x155   :  { %776 = vst [vmem:[%s1097_s4 + $0x38] sm:$0xff] %v768_v18  }

// kernel: conv_bn_net_forward.9
= control target key start
LH: loop header
LB: loop body
LE: loop exit
PB: predicated region body
PF: predicated region fallthrough
CT: control target
= control target key end

     0   :  { %s532_s1 = inlined_call_operand.vmem [shape: bf16[256,128], index: 1, kind: input, shape index: {}]   ;;  %s533_s0 = inlined_call_operand.vmem [shape: bf16[32,256], index: 0, kind: input, shape index: {}]   ;;  %s534_s2 = inlined_call_operand.vmem [shape: f32[1,128], index: 2, kind: input, shape index: {}]   ;;  %s535_s3 = inlined_call_operand.vmem [shape: f32[1,128], index: 3, kind: input, shape index: {}]   ;;  %s536_s4 = inlined_call_operand.vmem [shape: bf16[32,128], index: 4, kind: output, shape index: {}]  }
   0x1   :  { %v385_v0 = vld [vmem:[%s532_s1 + $0x38] sm:$0xff]  ;;  %v384_v2 = vld [vmem:[%s532_s1 + $0x30] sm:$0xff]  ;;  %v383_v4 = vld [vmem:[%s532_s1 + $0x28] sm:$0xff] }
   0x2   :  { %v393_v1 = vld [vmem:[%s532_s1 + $0x78] sm:$0xff]  ;;  %169 = vmatpush.bf16.msra.mxu0 %v385_v0  ;;  %405 = vmatpush.bf16.msra.mxu2 %v385_v0  ;;  %v392_v3 = vld [vmem:[%s532_s1 + $0x70] sm:$0xff]  ;;  %v391_v5 = vld [vmem:[%s532_s1 + $0x68] sm:$0xff] }
   0x3   :  { %188 = vmatpush.bf16.msra.mxu1 %v393_v1  ;;  %413 = vmatpush.bf16.msra.mxu3 %v393_v1  ;;  %v382_v6 = vld [vmem:[%s532_s1 + $0x20] sm:$0xff]  ;;  %v381_v8 = vld [vmem:[%s532_s1 + $0x18] sm:$0xff]  ;;  %v380_v10 = vld [vmem:[%s532_s1 + $0x10] sm:$0xff] }
   0x4   :  { %v390_v7 = vld [vmem:[%s532_s1 + $0x60] sm:$0xff]  ;;  %v389_v9 = vld [vmem:[%s532_s1 + $0x58] sm:$0xff]  ;;  %v388_v11 = vld [vmem:[%s532_s1 + $0x50] sm:$0xff] }
   0x5   :  { %v379_v12 = vld [vmem:[%s532_s1 + $0x8] sm:$0xff]  ;;  %v378_v14 = vld [vmem:[%s532_s1] sm:$0xff]  ;;  %v304_v18 = vld [vmem:[%s533_s0 + $0x10] sm:$0xf] }
   0x6   :  { %170 = vmatpush.bf16.msra.mxu0 %v384_v2  ;;  %406 = vmatpush.bf16.msra.mxu2 %v384_v2  ;;  %v387_v13 = vld [vmem:[%s532_s1 + $0x48] sm:$0xff]  ;;  %v386_v15 = vld [vmem:[%s532_s1 + $0x40] sm:$0xff]  ;;  %v377_v19 = vld [vmem:[%s533_s0 + $0x14] sm:$0xf0] }
   0x7   :  { %189 = vmatpush.bf16.msra.mxu1 %v392_v3  ;;  %414 = vmatpush.bf16.msra.mxu3 %v392_v3  ;;  %v296_v16 = vld [vmem:[%s533_s0] sm:$0xf]  ;;  %v375_v17 = vld [vmem:[%s533_s0 + $0x4] sm:$0xf0]  ;;  %v374_v20 = vld [vmem:[%s533_s0 + $0x4] sm:$0xf]  ;;  %v305_v25 = vor.u32 %v377_v19, %v304_v18 }
   0x8   :  { %v298_v21 = vld [vmem:[%s533_s0 + $0x8] sm:$0xf0]  ;;  %v376_v22 = vld [vmem:[%s533_s0 + $0x14] sm:$0xf]  ;;  %v306_v23 = vld [vmem:[%s533_s0 + $0x18] sm:$0xf0]  ;;  %v297_v24 = vor.u32 %v375_v17, %v296_v16 }
   0x9   :  { %v301_v26 = vor.u32 %v374_v20, %v298_v21  ;;  %v309_v27 = vor.u32 %v376_v22, %v306_v23  ;;  %v265_v18 = vld [vmem:[%s535_s3] sm:$0x1] }
   0xa   :  { %171 = vmatpush.bf16.msra.mxu0 %v383_v4  ;;  %407 = vmatpush.bf16.msra.mxu2 %v383_v4 }
   0xb   :  { %190 = vmatpush.bf16.msra.mxu1 %v391_v5  ;;  %415 = vmatpush.bf16.msra.mxu3 %v391_v5 }
   0xe   :  { %172 = vmatpush.bf16.msra.mxu0 %v382_v6  ;;  %408 = vmatpush.bf16.msra.mxu2 %v382_v6 }
   0xf   :  { %191 = vmatpush.bf16.msra.mxu1 %v390_v7  ;;  %416 = vmatpush.bf16.msra.mxu3 %v390_v7 }
  0x12   :  { %173 = vmatpush.bf16.msra.mxu0 %v381_v8  ;;  %409 = vmatpush.bf16.msra.mxu2 %v381_v8 }
  0x13   :  { %192 = vmatpush.bf16.msra.mxu1 %v389_v9  ;;  %417 = vmatpush.bf16.msra.mxu3 %v389_v9 }
  0x16   :  { %174 = vmatpush.bf16.msra.mxu0 %v380_v10  ;;  %410 = vmatpush.bf16.msra.mxu2 %v380_v10 }
  0x17   :  { %193 = vmatpush.bf16.msra.mxu1 %v388_v11  ;;  %418 = vmatpush.bf16.msra.mxu3 %v388_v11 }
  0x1a   :  { %175 = vmatpush.bf16.msra.mxu0 %v379_v12  ;;  %411 = vmatpush.bf16.msra.mxu2 %v379_v12 }
  0x1b   :  { %194 = vmatpush.bf16.msra.mxu1 %v387_v13  ;;  %419 = vmatpush.bf16.msra.mxu3 %v387_v13 }
  0x1e   :  { %176 = vmatpush.bf16.msra.mxu0 %v378_v14  ;;  %412 = vmatpush.bf16.msra.mxu2 %v378_v14  ;;  %v252_v14 = vld [vmem:[%s534_s2] sm:$0x1] }
  0x1f   :  { %195 = vmatpush.bf16.msra.mxu1 %v386_v15  ;;  %420 = vmatpush.bf16.msra.mxu3 %v386_v15 }
  0x21   :  { %177 = vmatmul.bf16.vlgmr.msra.gmra.mxu0 %v297_v24  ;;  %182 = vmatmul.bf16.vlgmr.msra.gmra.mxu2 %v305_v25 }
  0x22   :  { %196 = vmatmul.bf16.vlgmr.msra.gmra.mxu1 %v301_v26  ;;  %201 = vmatmul.bf16.vlgmr.msra.gmra.mxu3 %v309_v27 }
  0x9e   :  { %v178_v28 = vpop.f32.mrf.mxu0 }
  0x9f   :  { %v197_v29 = vpop.f32.mrf.mxu1 }
  0xa0   :  { %v198_v32 = vadd.f32 %v197_v29, %v178_v28 }
  0xa2   :  { %v207_v36 = vmax.f32 %v198_v32, 0.0 }
  0xa4   :  { %v183_v30 = vpop.f32.mrf.mxu2 }
  0xa5   :  { %v202_v31 = vpop.f32.mrf.mxu3 }
  0xa6   :  { %v180_v33 = vpop.f32.mrf.mxu0  ;;  %v203_v37 = vadd.f32 %v202_v31, %v183_v30 }
  0xa7   :  { %v199_v34 = vpop.f32.mrf.mxu1 }
  0xa8   :  { %v200_v35 = vadd.f32 %v199_v34, %v180_v33  ;;  %v209_v42 = vmax.f32 %v203_v37, 0.0 }
  0xaa   :  { %v208_v38 = vmax.f32 %v200_v35, 0.0 }
  0xac   :  { %v211_v39 = vadd.f32 %v208_v38, %v207_v36  ;;  %v185_v40 = vpop.f32.mrf.mxu2 }
  0xad   :  { %v204_v41 = vpop.f32.mrf.mxu3 }
  0xae   :  { %v205_v43 = vadd.f32 %v204_v41, %v185_v40  ;;  %v212_v45 = vadd.f32 %v211_v39, %v209_v42 }
  0xb0   :  { %v210_v44 = vmax.f32 %v205_v43, 0.0 }
  0xb2   :  { %v213_v46 = vadd.f32 %v212_v45, %v210_v44 }
  0xb4   :  { %v214_v47 = vrot.slane %v213_v46, 4 }
  0xb6   :  { %v215_v48 = vadd.f32 %v214_v47, %v213_v46 }
  0xb8   :  { %v216_v49 = vrot.slane %v215_v48, 2 }
  0xba   :  { %v217_v50 = vadd.f32 %v216_v49, %v215_v48 }
  0xbc   :  { %v218_v51 = vrot.slane %v217_v50, 1 }
  0xbe   :  { %v219_v52 = vadd.f32 %v218_v51, %v217_v50 }
  0xc0   :  { %v220_v53 = vmul.f32 0.03125, %v219_v52 }
  0xc2   :  { %v230_v54 = vsub.f32 %v207_v36, %v220_v53  ;;  %v231_v55 = vsub.f32 %v208_v38, %v220_v53  ;;  %v232_v56 = vsub.f32 %v209_v42, %v220_v53  ;;  %v233_v57 = vsub.f32 %v210_v44, %v220_v53 }
  0xc4   :  { %v238_v58 = vmul.f32 %v230_v54, %v230_v54  ;;  %v239_v59 = vmul.f32 %v231_v55, %v231_v55  ;;  %v240_v60 = vmul.f32 %v232_v56, %v232_v56  ;;  %v241_v62 = vmul.f32 %v233_v57, %v233_v57 }
  0xc6   :  { %v242_v61 = vadd.f32 %v239_v59, %v238_v58 }
  0xc8   :  { %v243_v63 = vadd.f32 %v242_v61, %v240_v60 }
  0xca   :  { %v244_v0 = vadd.f32 %v243_v63, %v241_v62 }
  0xcc   :  { %v245_v1 = vrot.slane %v244_v0, 4 }
  0xce   :  { %v246_v2 = vadd.f32 %v245_v1, %v244_v0 }
  0xd0   :  { %v247_v3 = vrot.slane %v246_v2, 2 }
  0xd2   :  { %v248_v4 = vadd.f32 %v247_v3, %v246_v2 }
  0xd4   :  { %v249_v5 = vrot.slane %v248_v4, 1 }
  0xd6   :  { %v250_v6 = vadd.f32 %v249_v5, %v248_v4 }
  0xd8   :  { %v251_v7 = vmul.f32 0.03125, %v250_v6 }
  0xda   :  { %v253_v8 = vadd.f32 1e-05, %v251_v7 }
  0xdc   :  { %421 = vrsqrt.f32 %v253_v8  ;;  %vm260_vm1 = vweird.f32 %v253_v8 }
  0xe2   :  { %v422_v9 = vpop.eup %421 }
  0xe3   :  { %v255_v10 = vmul.f32 %v422_v9, %v253_v8  ;;  %vm261_vm0 = vweird.f32 %v422_v9 }
  0xe4   :  { %vm262_vm2 = vmor %vm260_vm1, %vm261_vm0 }
  0xe5   :  { %v256_v11 = vmul.f32 %v422_v9, %v255_v10 }
  0xe7   :  { %v257_v12 = vmul.f32 0.5, %v256_v11 }
  0xe9   :  { %v258_v13 = vsub.f32 1.5, %v257_v12 }
  0xeb   :  { %v259_v15 = vmul.f32 %v422_v9, %v258_v13 }
  0xed   :  { %v263_v16 = vsel %vm262_vm2, %v422_v9, %v259_v15 }
  0xee   :  { %v264_v17 = vmul.f32 %v263_v16, %v252_v14 }
  0xf0   :  { %v266_v19 = vmul.f32 %v264_v17, %v220_v53  ;;  %v269_v20 = vperm.slane %v264_v17, 0 }
  0xf2   :  { %v267_v21 = vsub.f32 %v265_v18, %v266_v19  ;;  %v271_v22 = vmul.f32 %v269_v20, %v207_v36  ;;  %v272_v23 = vmul.f32 %v269_v20, %v208_v38  ;;  %v273_v24 = vmul.f32 %v269_v20, %v209_v42 }
  0xf3   :  { %v274_v25 = vmul.f32 %v269_v20, %v210_v44 }
  0xf4   :  { %v276_v26 = vperm.slane %v267_v21, 0 }
  0xf6   :  { %v278_v27 = vadd.f32 %v276_v26, %v271_v22  ;;  %v279_v28 = vadd.f32 %v276_v26, %v272_v23  ;;  %v280_v29 = vadd.f32 %v276_v26, %v273_v24  ;;  %v281_v30 = vadd.f32 %v276_v26, %v274_v25 }
  0xf8   :  { %v397_v31 = vpack.c.bf16 %v279_v28, %v278_v27  ;;  %v402_v32 = vpack.c.bf16 %v281_v30, %v280_v29 }
  0xfa   :  { %398 = vst [vmem:[%s536_s4] sm:$0xff] %v397_v31  }
  0xfb   :  { %404 = vst [vmem:[%s536_s4 + $0x8] sm:$0xff] %v402_v32  }

// kernel: conv_bn_net_forward.11
= control target key start
LH: loop header
LB: loop body
LE: loop exit
PB: predicated region body
PF: predicated region fallthrough
CT: control target
= control target key end

     0   :  { %s250_s0 = inlined_call_operand.vmem [shape: bf16[2,16,128], index: 0, kind: input, shape index: {}]   ;;  %s251_s1 = inlined_call_operand.vmem [shape: f32[128,128], index: 1, kind: input, shape index: {}]   ;;  %s252_s2 = inlined_call_operand.vmem [shape: f32[1,128], index: 2, kind: input, shape index: {}]   ;;  %s253_s3 = inlined_call_operand.hbm [shape: f32[2,128], index: 3, kind: output, shape index: {}]  }
   0x1   :  { %v52_v0 = vld [vmem:[%s251_s1 + $0x78] sm:$0xff]  ;;  %v51_v1 = vld [vmem:[%s251_s1 + $0x70] sm:$0xff]  ;;  %v50_v2 = vld [vmem:[%s251_s1 + $0x68] sm:$0xff] }
   0x2   :  { %62 = vmatpush.msra.mxu0 %v52_v0  ;;  %v49_v3 = vld [vmem:[%s251_s1 + $0x60] sm:$0xff]  ;;  %v136_v5 = vld [vmem:[%s250_s0 + $0x8] sm:$0xff]   ;;  %v48_v6 = vld [vmem:[%s251_s1 + $0x58] sm:$0xff] }
   0x3   :  { %v129_v4 = vld [vmem:[%s250_s0] sm:$0xff]   ;;  %v134_v9 = vunpack.c.l.bf16 %v136_v5  ;;  %v135_v10 = vunpack.c.h.bf16 %v136_v5 }
   0x4   :  { %63 = vmatpush.msra.mxu0 %v51_v1  ;;  %v130_v7 = vunpack.c.l.bf16 %v129_v4  ;;  %v131_v8 = vunpack.c.h.bf16 %v129_v4 }
   0x6   :  { %64 = vmatpush.msra.mxu0 %v50_v2 }
   0x7   :  { %8 = vsyncpa [#allocation3], 0  ;;  %v47_v11 = vld [vmem:[%s251_s1 + $0x50] sm:$0xff]  ;;  %v23_v12 = vmax.f32 %v130_v7, %v131_v8  ;;  %v30_v13 = vmax.f32 %v134_v9, %v135_v10  ;;  %v46_v14 = vld [vmem:[%s251_s1 + $0x48] sm:$0xff]  ;;  %vm59_vm0 = vcmask 1041409   ;;  %v82_v37 = vlaneseq  ;;  %s119_s24 = sshll.u32 %s253_s3, 4  ;;  %s120_s24 = int_to_ptr.hbm [resolvable:$true] %s119_s24 }
   0x8   :  { %65 = vmatpush.msra.mxu0 %v49_v3  ;;  %v45_v17 = vld [vmem:[%s251_s1 + $0x40] sm:$0xff]  ;;  %v44_v20 = vld [vmem:[%s251_s1 + $0x38] sm:$0xff]  ;;  %v43_v23 = vld [vmem:[%s251_s1 + $0x30] sm:$0xff]  ;;  %vm86_vm2 = vcmask 1041408  }
   0x9   :  { %v24_v15 = vrot.slane %v23_v12, 4  ;;  %v31_v16 = vrot.slane %v30_v13, 4  ;;  %v42_v26 = vld [vmem:[%s251_s1 + $0x28] sm:$0xff]  ;;  %v41_v27 = vld [vmem:[%s251_s1 + $0x20] sm:$0xff]  ;;  %v40_v30 = vld [vmem:[%s251_s1 + $0x18] sm:$0xff]  ;;  %v83_v38 = vand.u32 127, %v82_v37 }
   0xa   :  { %66 = vmatpush.msra.mxu0 %v48_v6  ;;  %v39_v31 = vld [vmem:[%s251_s1 + $0x10] sm:$0xff]  ;;  %v38_v34 = vld [vmem:[%s251_s1 + $0x8] sm:$0xff]  ;;  %v37_v35 = vld [vmem:[%s251_s1] sm:$0xff]  ;;  %s169_s1 = smov [#allocation2]  }
   0xb   :  { %v25_v18 = vmax.f32 %v23_v12, %v24_v15  ;;  %v32_v19 = vmax.f32 %v30_v13, %v31_v16  ;;  %v138_v39 = vld [vmem:[%s252_s2] ss:$0 sm:$0xff]  ;;  %vm84_vm1 = vcmp.lt.s32.totalorder %v83_v38, 10  ;;  %s117_s2 = sshll.u32 %s169_s1, 4  ;;  %s118_s2 = int_to_ptr.vmem [resolvable:$true] %s117_s2 }
   0xc   :  { %67 = vmatpush.msra.mxu0 %v47_v11 }
   0xd   :  { %v26_v21 = vrot.slane %v25_v18, 2  ;;  %v33_v22 = vrot.slane %v32_v19, 2 }
   0xe   :  { %68 = vmatpush.msra.mxu0 %v46_v14 }
   0xf   :  { %v27_v24 = vmax.f32 %v25_v18, %v26_v21  ;;  %v34_v25 = vmax.f32 %v32_v19, %v33_v22 }
  0x10   :  { %69 = vmatpush.msra.mxu0 %v45_v17 }
  0x11   :  { %v28_v28 = vrot.slane %v27_v24, 1  ;;  %v35_v29 = vrot.slane %v34_v25, 1 }
  0x12   :  { %70 = vmatpush.msra.mxu0 %v44_v20 }
  0x13   :  { %v29_v32 = vmax.f32 %v27_v24, %v28_v28  ;;  %v36_v33 = vmax.f32 %v34_v25, %v35_v29 }
  0x14   :  { %71 = vmatpush.msra.mxu0 %v43_v23 }
  0x15   :  { %v60_v36 = vsel %vm59_vm0, %v36_v33, %v29_v32 }
  0x16   :  { %72 = vmatpush.msra.mxu0 %v42_v26 }
  0x18   :  { %73 = vmatpush.msra.mxu0 %v41_v27 }
  0x1a   :  { %74 = vmatpush.msra.mxu0 %v40_v30 }
  0x1c   :  { %75 = vmatpush.msra.mxu0 %v39_v31 }
  0x1e   :  { %76 = vmatpush.msra.mxu0 %v38_v34 }
  0x20   :  { %77 = vmatpush.msra.mxu0 %v37_v35 }
  0x21   :  { %78 = vmatmul.f32.vlgmr.msra.gmra.mxu0 %v60_v36 }
  0x9e   :  { %v79_v40 = vpop.f32.mrf.mxu0 }
  0x9f   :  { %v80_v41 = vadd.f32 %v138_v39, %v79_v40 }
  0xa1   :  { %v85_v42 = vsel %vm84_vm1, %v80_v41, -1e+30 }
  0xa2   :  { %v87_v43 = vsel %vm86_vm2, %v85_v42, -inf }
  0xa3   :  { %88 = vmax.xlane.f32.xlu0 %v87_v43 }
 0x116   :  { %v89_v44 = vpop.xlane.xlu0 %88 }
 0x117   :  { %v90_v45 = vsub.f32 %v85_v42, %v89_v44 }
 0x119   :  { %v91_v46 = vmul.f32 1.442695, %v90_v45 }
 0x11b   :  { %139 = vpow2.f32 %v91_v46 }
 0x121   :  { %v140_v47 = vpop.eup %139 }
 0x122   :  { %v93_v48 = vsel %vm86_vm2, %v140_v47, 0.0 }
 0x123   :  { %94 = vadd.xlane.f32.xlu0 %v93_v48 }
 0x196   :  { %v95_v49 = vpop.xlane.xlu0 %94 }
 0x197   :  { %141 = vrcp.f32 %v95_v49  ;;  %v107_v53 = vand.u32 2147483648, %v95_v49  ;;  %v105_v55 = vand.u32 2147483647, %v95_v49  ;;  %vm101_vm4 = vweird.f32 %v95_v49 }
 0x199   :  { %v108_v57 = vor.u32 1.1754944e-38, %v107_v53  ;;  %vm106_vm6 = vcmp.eq.f32.partialorder %v105_v55, 8.507059e+37 }
 0x19d   :  { %v142_v50 = vpop.eup %141 }
 0x19e   :  { %v97_v51 = vmul.f32 %v142_v50, %v95_v49  ;;  %vm102_vm3 = vweird.f32 %v142_v50 }
 0x19f   :  { %vm103_vm5 = vmor %vm101_vm4, %vm102_vm3 }
 0x1a0   :  { %v98_v52 = vsub.f32 1.0, %v97_v51 }
 0x1a2   :  { %v99_v54 = vmul.f32 %v142_v50, %v98_v52 }
 0x1a4   :  { %v100_v56 = vadd.f32 %v142_v50, %v99_v54 }
 0x1a6   :  { %v104_v58 = vsel %vm103_vm5, %v142_v50, %v100_v56 }
 0x1a7   :  { %v109_v59 = vsel %vm106_vm6, %v108_v57, %v104_v58 }
 0x1a8   :  { %v110_v60 = vmul.f32 %v140_v47, %v109_v59 }
 0x1aa   :  { %111 = vst [vmem:[#allocation2] sm:$0x3] %v110_v60 }
 0x1ab   :  { %122 = dma.vmem_to_hbm [thread:$0]  %s118_s2, 32, %s120_s24, [#allocation3]  }
 0x1ac   :  { %167 = dma.done.wait [#allocation3], 32  }
 0x1ad   :  { %168 = vsyncadd [#allocation3], 4294967264 }
 0x1ae   :  { %127 = vsyncpa [#allocation3], 1 }

// kernel: conv_bn_net_forward.10
= control target key start
LH: loop header
LB: loop body
LE: loop exit
PB: predicated region body
PF: predicated region fallthrough
CT: control target
= control target key end

     0   :  { %s709_s1 = inlined_call_operand.vmem [shape: bf16[384,128], index: 1, kind: input, shape index: {}]   ;;  %s710_s0 = inlined_call_operand.vmem [shape: bf16[32,384], index: 0, kind: input, shape index: {}]   ;;  %s711_s2 = inlined_call_operand.vmem [shape: f32[1,128], index: 2, kind: input, shape index: {}]   ;;  %s712_s3 = inlined_call_operand.vmem [shape: f32[1,128], index: 3, kind: input, shape index: {}]   ;;  %s713_s4 = inlined_call_operand.vmem [shape: bf16[32,128], index: 4, kind: output, shape index: {}]  }
   0x1   :  { %v526_v0 = vld [vmem:[%s709_s1 + $0x38] sm:$0xff]  ;;  %v525_v3 = vld [vmem:[%s709_s1 + $0x30] sm:$0xff]  ;;  %v524_v6 = vld [vmem:[%s709_s1 + $0x28] sm:$0xff] }
   0x2   :  { %v534_v1 = vld [vmem:[%s709_s1 + $0x78] sm:$0xff]  ;;  %249 = vmatpush.bf16.msra.mxu0 %v526_v0  ;;  %v533_v4 = vld [vmem:[%s709_s1 + $0x70] sm:$0xff]  ;;  %554 = vmatpush.bf16.msra.mxu3 %v526_v0  ;;  %v532_v7 = vld [vmem:[%s709_s1 + $0x68] sm:$0xff] }
   0x3   :  { %v542_v2 = vld [vmem:[%s709_s1 + $0xb8] sm:$0xff]  ;;  %268 = vmatpush.bf16.msra.mxu1 %v534_v1  ;;  %v541_v5 = vld [vmem:[%s709_s1 + $0xb0] sm:$0xff]  ;;  %v540_v8 = vld [vmem:[%s709_s1 + $0xa8] sm:$0xff] }
   0x4   :  { %287 = vmatpush.bf16.msra.mxu2 %v542_v2  ;;  %v523_v9 = vld [vmem:[%s709_s1 + $0x20] sm:$0xff]  ;;  %v522_v12 = vld [vmem:[%s709_s1 + $0x18] sm:$0xff]  ;;  %v521_v15 = vld [vmem:[%s709_s1 + $0x10] sm:$0xff] }
   0x5   :  { %v531_v10 = vld [vmem:[%s709_s1 + $0x60] sm:$0xff]  ;;  %v530_v13 = vld [vmem:[%s709_s1 + $0x58] sm:$0xff]  ;;  %v529_v16 = vld [vmem:[%s709_s1 + $0x50] sm:$0xff] }
   0x6   :  { %250 = vmatpush.bf16.msra.mxu0 %v525_v3  ;;  %555 = vmatpush.bf16.msra.mxu3 %v525_v3  ;;  %v539_v11 = vld [vmem:[%s709_s1 + $0xa0] sm:$0xff]  ;;  %v538_v14 = vld [vmem:[%s709_s1 + $0x98] sm:$0xff]  ;;  %v537_v17 = vld [vmem:[%s709_s1 + $0x90] sm:$0xff] }
   0x7   :  { %269 = vmatpush.bf16.msra.mxu1 %v533_v4  ;;  %v520_v18 = vld [vmem:[%s709_s1 + $0x8] sm:$0xff]  ;;  %v519_v21 = vld [vmem:[%s709_s1] sm:$0xff]  ;;  %v397_v27 = vld [vmem:[%s710_s0 + $0xc] sm:$0xf0] }
   0x8   :  { %288 = vmatpush.bf16.msra.mxu2 %v541_v5  ;;  %v528_v19 = vld [vmem:[%s709_s1 + $0x48] sm:$0xff]  ;;  %v527_v22 = vld [vmem:[%s709_s1 + $0x40] sm:$0xff]  ;;  %v515_v29 = vld [vmem:[%s710_s0 + $0x10] sm:$0xf0] }
   0x9   :  { %v536_v20 = vld [vmem:[%s709_s1 + $0x88] sm:$0xff]  ;;  %v535_v23 = vld [vmem:[%s709_s1 + $0x80] sm:$0xff]  ;;  %v407_v30 = vld [vmem:[%s710_s0 + $0x18] sm:$0xf] }
   0xa   :  { %251 = vmatpush.bf16.msra.mxu0 %v524_v6  ;;  %556 = vmatpush.bf16.msra.mxu3 %v524_v6  ;;  %v395_v24 = vld [vmem:[%s710_s0] sm:$0xf]  ;;  %v514_v25 = vld [vmem:[%s710_s0 + $0x8] sm:$0xf0]  ;;  %v513_v26 = vld [vmem:[%s710_s0 + $0x4] sm:$0xf] }
   0xb   :  { %270 = vmatpush.bf16.msra.mxu1 %v532_v7  ;;  %v403_v28 = vld [vmem:[%s710_s0 + $0x8] sm:$0xf]  ;;  %v517_v31 = vld [vmem:[%s710_s0 + $0x20] sm:$0xf0]  ;;  %v396_v32 = vor.u32 %v514_v25, %v395_v24  ;;  %v400_v33 = vor.u32 %v513_v26, %v397_v27  ;;  %v516_v36 = vld [vmem:[%s710_s0 + $0x1c] sm:$0xf] }
   0xc   :  { %289 = vmatpush.bf16.msra.mxu2 %v540_v8  ;;  %v404_v34 = vor.u32 %v515_v29, %v403_v28  ;;  %v408_v35 = vor.u32 %v517_v31, %v407_v30  ;;  %v409_v37 = vld [vmem:[%s710_s0 + $0x24] sm:$0xf0]  ;;  %v415_v38 = vld [vmem:[%s710_s0 + $0x20] sm:$0xf]  ;;  %v518_v39 = vld [vmem:[%s710_s0 + $0x28] sm:$0xf0] }
   0xd   :  { %v412_v40 = vor.u32 %v516_v36, %v409_v37  ;;  %v416_v41 = vor.u32 %v518_v39, %v415_v38  ;;  %v351_v36 = vld [vmem:[%s711_s2] sm:$0x1] }
   0xe   :  { %252 = vmatpush.bf16.msra.mxu0 %v523_v9  ;;  %557 = vmatpush.bf16.msra.mxu3 %v523_v9 }
   0xf   :  { %271 = vmatpush.bf16.msra.mxu1 %v531_v10 }
  0x10   :  { %290 = vmatpush.bf16.msra.mxu2 %v539_v11 }
  0x12   :  { %253 = vmatpush.bf16.msra.mxu0 %v522_v12  ;;  %558 = vmatpush.bf16.msra.mxu3 %v522_v12 }
  0x13   :  { %272 = vmatpush.bf16.msra.mxu1 %v530_v13 }
  0x14   :  { %291 = vmatpush.bf16.msra.mxu2 %v538_v14 }
  0x16   :  { %254 = vmatpush.bf16.msra.mxu0 %v521_v15  ;;  %559 = vmatpush.bf16.msra.mxu3 %v521_v15 }
  0x17   :  { %273 = vmatpush.bf16.msra.mxu1 %v529_v16 }
  0x18   :  { %292 = vmatpush.bf16.msra.mxu2 %v537_v17 }
  0x1a   :  { %255 = vmatpush.bf16.msra.mxu0 %v520_v18  ;;  %560 = vmatpush.bf16.msra.mxu3 %v520_v18 }
  0x1b   :  { %274 = vmatpush.bf16.msra.mxu1 %v528_v19 }
  0x1c   :  { %293 = vmatpush.bf16.msra.mxu2 %v536_v20 }
  0x1e   :  { %256 = vmatpush.bf16.msra.mxu0 %v519_v21  ;;  %561 = vmatpush.bf16.msra.mxu3 %v519_v21 }
  0x1f   :  { %275 = vmatpush.bf16.msra.mxu1 %v527_v22 }
  0x20   :  { %294 = vmatpush.bf16.msra.mxu2 %v535_v23 }
  0x21   :  { %257 = vmatmul.bf16.vlgmr.msra.gmra.mxu0 %v396_v32  ;;  %262 = vmatmul.bf16.vlgmr.msra.gmra.mxu3 %v408_v35 }
  0x22   :  { %276 = vmatmul.bf16.vlgmr.msra.gmra.mxu1 %v400_v33 }
  0x23   :  { %295 = vmatmul.bf16.vlgmr.msra.gmra.mxu2 %v404_v34 }
  0x32   :  { %281 = vmatmul.bf16.gmra.mxu1 %v412_v40  ;;  %v364_v40 = vld [vmem:[%s712_s3] sm:$0x1] }
  0x33   :  { %300 = vmatmul.bf16.gmra.mxu2 %v416_v41 }
  0x9e   :  { %v258_v45 = vpop.f32.mrf.mxu0 }
  0x9f   :  { %v277_v42 = vpop.f32.mrf.mxu1 }
  0xa0   :  { %v278_v50 = vadd.f32 %v277_v42, %v258_v45 }
  0xa4   :  { %v263_v49 = vpop.f32.mrf.mxu3 }
  0xa6   :  { %v296_v43 = vpop.f32.mrf.mxu2  ;;  %v260_v48 = vpop.f32.mrf.mxu0 }
  0xa7   :  { %v279_v44 = vpop.f32.mrf.mxu1  ;;  %v297_v55 = vadd.f32 %v296_v43, %v278_v50 }
  0xa8   :  { %v280_v51 = vadd.f32 %v279_v44, %v260_v48 }
  0xa9   :  { %v306_v60 = vmax.f32 %v297_v55, 0.0 }
  0xac   :  { %v265_v59 = vpop.f32.mrf.mxu3 }
  0xae   :  { %v298_v46 = vpop.f32.mrf.mxu2 }
  0xaf   :  { %v282_v47 = vpop.f32.mrf.mxu1  ;;  %v299_v54 = vadd.f32 %v298_v46, %v280_v51 }
  0xb0   :  { %v283_v52 = vadd.f32 %v282_v47, %v263_v49 }
  0xb1   :  { %v307_v58 = vmax.f32 %v299_v54, 0.0 }
  0xb3   :  { %v310_v0 = vadd.f32 %v307_v58, %v306_v60 }
  0xb6   :  { %v301_v53 = vpop.f32.mrf.mxu2 }
  0xb7   :  { %v302_v56 = vadd.f32 %v301_v53, %v283_v52  ;;  %v284_v57 = vpop.f32.mrf.mxu1 }
  0xb8   :  { %v285_v62 = vadd.f32 %v284_v57, %v265_v59 }
  0xb9   :  { %v308_v61 = vmax.f32 %v302_v56, 0.0 }
  0xbb   :  { %v311_v2 = vadd.f32 %v310_v0, %v308_v61 }
  0xbe   :  { %v303_v63 = vpop.f32.mrf.mxu2 }
  0xbf   :  { %v304_v1 = vadd.f32 %v303_v63, %v285_v62 }
  0xc1   :  { %v309_v3 = vmax.f32 %v304_v1, 0.0 }
  0xc3   :  { %v312_v4 = vadd.f32 %v311_v2, %v309_v3 }
  0xc5   :  { %v313_v5 = vrot.slane %v312_v4, 4 }
  0xc7   :  { %v314_v6 = vadd.f32 %v313_v5, %v312_v4 }
  0xc9   :  { %v315_v7 = vrot.slane %v314_v6, 2 }
  0xcb   :  { %v316_v8 = vadd.f32 %v315_v7, %v314_v6 }
  0xcd   :  { %v317_v9 = vrot.slane %v316_v8, 1 }
  0xcf   :  { %v318_v10 = vadd.f32 %v317_v9, %v316_v8 }
  0xd1   :  { %v319_v11 = vmul.f32 0.03125, %v318_v10 }
  0xd3   :  { %v329_v12 = vsub.f32 %v306_v60, %v319_v11  ;;  %v330_v13 = vsub.f32 %v307_v58, %v319_v11  ;;  %v331_v14 = vsub.f32 %v308_v61, %v319_v11  ;;  %v332_v15 = vsub.f32 %v309_v3, %v319_v11 }
  0xd5   :  { %v337_v16 = vmul.f32 %v329_v12, %v329_v12  ;;  %v338_v17 = vmul.f32 %v330_v13, %v330_v13  ;;  %v339_v18 = vmul.f32 %v331_v14, %v331_v14  ;;  %v340_v20 = vmul.f32 %v332_v15, %v332_v15 }
  0xd7   :  { %v341_v19 = vadd.f32 %v338_v17, %v337_v16 }
  0xd9   :  { %v342_v21 = vadd.f32 %v341_v19, %v339_v18 }
  0xdb   :  { %v343_v22 = vadd.f32 %v342_v21, %v340_v20 }
  0xdd   :  { %v344_v23 = vrot.slane %v343_v22, 4 }
  0xdf   :  { %v345_v24 = vadd.f32 %v344_v23, %v343_v22 }
  0xe1   :  { %v346_v25 = vrot.slane %v345_v24, 2 }
  0xe3   :  { %v347_v26 = vadd.f32 %v346_v25, %v345_v24 }
  0xe5   :  { %v348_v27 = vrot.slane %v347_v26, 1 }
  0xe7   :  { %v349_v28 = vadd.f32 %v348_v27, %v347_v26 }
  0xe9   :  { %v350_v29 = vmul.f32 0.03125, %v349_v28 }
  0xeb   :  { %v352_v30 = vadd.f32 1e-05, %v350_v29 }
  0xed   :  { %562 = vrsqrt.f32 %v352_v30  ;;  %vm359_vm1 = vweird.f32 %v352_v30 }
  0xf3   :  { %v563_v31 = vpop.eup %562 }
  0xf4   :  { %v354_v32 = vmul.f32 %v563_v31, %v352_v30  ;;  %vm360_vm0 = vweird.f32 %v563_v31 }
  0xf5   :  { %vm361_vm2 = vmor %vm359_vm1, %vm360_vm0 }
  0xf6   :  { %v355_v33 = vmul.f32 %v563_v31, %v354_v32 }
  0xf8   :  { %v356_v34 = vmul.f32 0.5, %v355_v33 }
  0xfa   :  { %v357_v35 = vsub.f32 1.5, %v356_v34 }
  0xfc   :  { %v358_v37 = vmul.f32 %v563_v31, %v357_v35 }
  0xfe   :  { %v362_v38 = vsel %vm361_vm2, %v563_v31, %v358_v37 }
  0xff   :  { %v363_v39 = vmul.f32 %v362_v38, %v351_v36 }
 0x101   :  { %v365_v41 = vmul.f32 %v363_v39, %v319_v11  ;;  %v368_v42 = vperm.slane %v363_v39, 0 }
 0x103   :  { %v366_v43 = vsub.f32 %v364_v40, %v365_v41  ;;  %v370_v44 = vmul.f32 %v368_v42, %v306_v60  ;;  %v371_v45 = vmul.f32 %v368_v42, %v307_v58  ;;  %v372_v46 = vmul.f32 %v368_v42, %v308_v61 }
 0x104   :  { %v373_v47 = vmul.f32 %v368_v42, %v309_v3 }
 0x105   :  { %v375_v48 = vperm.slane %v366_v43, 0 }
 0x107   :  { %v377_v49 = vadd.f32 %v375_v48, %v370_v44  ;;  %v378_v50 = vadd.f32 %v375_v48, %v371_v45  ;;  %v379_v51 = vadd.f32 %v375_v48, %v372_v46  ;;  %v380_v52 = vadd.f32 %v375_v48, %v373_v47 }
 0x109   :  { %v546_v53 = vpack.c.bf16 %v378_v50, %v377_v49  ;;  %v551_v54 = vpack.c.bf16 %v380_v52, %v379_v51 }
 0x10b   :  { %547 = vst [vmem:[%s713_s4] sm:$0xff] %v546_v53  }
 0x10c   :  { %553 = vst [vmem:[%s713_s4 + $0x8] sm:$0xff] %v551_v54  }

</bundles_post_ra>
